<compile_context>
chip_gen: v5e
topology: v5e:2x2
jax: 0.10.0
libtpu: 0.0.40
codegen_flags: <defaults>
</compile_context>

<pallas_src>
import functools

import jax
import jax.numpy as jnp
import numpy as np
from jax import lax
from jax.experimental import pallas as pl
from jax.experimental.pallas import tpu as pltpu

FILTER_LENGTH = 3
J = 2
K = 128
K2 = 128
L = 64
WORD_DEPTH = 128


# ----------------------------------------------------------------------------
# Fused kernel: (q, pos, negs) -> softmax probs over [pos, neg_0, ..., neg_J-1]
# One grid step handles Nb batch elements (1 query + J+1 docs each).
# ----------------------------------------------------------------------------
def cdssm_kernel(q_ref, pos_ref, negs_ref,
                 qw1_ref, qb1_ref, qw2_ref, qb2_ref, qws_ref, qbs_ref,
                 dw1_ref, db1_ref, dw2_ref, db2_ref, dws_ref, dbs_ref,
                 gw_ref, gb_ref, out_ref):
    nb, T, D = q_ref.shape
    Jn = negs_ref.shape[0]
    jp1 = Jn + 1
    valid_t = T - 2 * (FILTER_LENGTH - 1)     # time positions that survive 2 convs

    def shifted(x2d, k):
        # rows r -> x2d[r + k]; the bottom k rows become zeros (masked later).
        m, c = x2d.shape
        return jnp.concatenate([x2d[k:, :], jnp.zeros((k, c), x2d.dtype)], axis=0)

    def conv_tanh(x2d, wcat_ref, b_ref):
        # im2col over the time axis: one (M, 3C) @ (3C, K) MXU matmul.
        cols = jnp.concatenate([x2d, shifted(x2d, 1), shifted(x2d, 2)], axis=-1)
        a = jnp.dot(cols, wcat_ref[...], preferred_element_type=jnp.float32)
        return jnp.tanh(a + b_ref[...])

    def tower(x2d, n_seq, w1_ref, b1_ref, w2_ref, b2_ref, ws_ref, bs_ref):
        # x2d: (n_seq * T, D) -> semantic vectors (n_seq, L)
        h1 = conv_tanh(x2d, w1_ref, b1_ref)   # valid rows: t <= T - 3
        h2 = conv_tanh(h1, w2_ref, b2_ref)    # valid rows: t <= T - 5
        m, k2 = h2.shape
        # mask rows whose conv window crossed a sequence boundary, then
        # max-over-time (kmax_pooling with k=1).  tanh outputs are in (-1, 1),
        # so -2.0 never wins the max.
        r_idx = lax.broadcasted_iota(jnp.int32, (m, k2), 0)
        h2m = jnp.where((r_idx % T) < valid_t, h2, -2.0)
        pooled = jnp.max(h2m.reshape(n_seq, T, k2), axis=1)          # (n_seq, K2)
        s = jnp.dot(pooled, ws_ref[...], preferred_element_type=jnp.float32)
        return jnp.tanh(s + bs_ref[...])                             # (n_seq, L)

    # --- query tower -------------------------------------------------------
    q2d = q_ref[...].reshape(nb * T, D)
    q_s = tower(q2d, nb, qw1_ref, qb1_ref, qw2_ref, qb2_ref, qws_ref, qbs_ref)

    # --- doc tower: pos + all negs stacked into one tall matmul -------------
    doc2d = jnp.concatenate(
        [pos_ref[...].reshape(nb * T, D)]
        + [negs_ref[j].reshape(nb * T, D) for j in range(Jn)],
        axis=0)                                                      # ((J+1)*nb*T, D)
    d_s = tower(doc2d, jp1 * nb, dw1_ref, db1_ref, dw2_ref, db2_ref,
                dws_ref, dbs_ref)                                    # ((J+1)*nb, L)
    d_s = d_s.reshape(jp1, nb, d_s.shape[-1])

    # --- scoring: per-batch dots, learn_gamma (w*x + b), softmax over J+1 ---
    cols = [jnp.sum(q_s * d_s[j], axis=-1, keepdims=True) for j in range(jp1)]
    sims = jnp.concatenate(cols, axis=-1)                            # (nb, J+1)
    g = sims * gw_ref[...] + gb_ref[...]                             # (1,1) broadcast
    g = g - jnp.max(g, axis=-1, keepdims=True)
    e = jnp.exp(g)
    p = e / jnp.sum(e, axis=-1, keepdims=True)
    out_ref[...] = p.reshape(nb, 1, jp1)


def _pick_nb(B, T, jp1, target_rows=512):
    """Batch elements per grid step: big enough to fill the MXU, but keep
    >= 2 grid steps (when possible) so both v7x TensorCores get work."""
    best = 1
    for cand in range(1, B + 1):
        if B % cand:
            continue
        steps = B // cand
        if B >= 2 and steps < 2:
            continue
        if jp1 * cand * T <= target_rows:
            best = cand
    return best


# ----------------------------------------------------------------------------
# Wrapper
# ----------------------------------------------------------------------------
def cdssm_forward(params, q, pos, negs):
    """q, pos: (B, T, WORD_DEPTH); negs: (J, B, T, WORD_DEPTH).

    Returns probs (B, J+1): softmax over [pos, neg_0, ..., neg_{J-1}] per batch
    element (equivalent to the list of (J+1,1,1) softmax tensors in PyTorch).
    """
    B, T, D = q.shape
    Jn = negs.shape[0]
    jp1 = Jn + 1
    assert T >= 2 * (FILTER_LENGTH - 1) + 1, "need two valid length-3 convs"

    nb = _pick_nb(B, T, jp1)
    grid = (B // nb,)

    # Flatten conv weights once in the wrapper: (3, Cin, Cout) -> (3*Cin, Cout)
    qw1 = params["q_w1"].reshape(FILTER_LENGTH * D, -1)
    qw2 = params["q_w2"].reshape(FILTER_LENGTH * K, -1)
    dw1 = params["d_w1"].reshape(FILTER_LENGTH * D, -1)
    dw2 = params["d_w2"].reshape(FILTER_LENGTH * K, -1)
    gw = params["gamma_w"].reshape(1, 1)
    gb = params["gamma_b"].reshape(1, 1)

    Kc, Kc2, Lo = qw1.shape[1], qw2.shape[1], params["q_ws"].shape[1]
    wspec = lambda shape: pl.BlockSpec(shape, lambda n: tuple(0 for _ in shape))

    out = pl.pallas_call(
        cdssm_kernel,
        out_shape=jax.ShapeDtypeStruct((B, 1, jp1), jnp.float32),
        grid_spec=pltpu.PrefetchScalarGridSpec(
            num_scalar_prefetch=0,
            grid=grid,
            in_specs=[
                pl.BlockSpec((nb, T, D), lambda n: (n, 0, 0)),        # q
                pl.BlockSpec((nb, T, D), lambda n: (n, 0, 0)),        # pos
                pl.BlockSpec((Jn, nb, T, D), lambda n: (0, n, 0, 0)),  # negs
                wspec((FILTER_LENGTH * D, Kc)),                       # q conv1 w
                wspec((1, Kc)),                                       # q conv1 b
                wspec((FILTER_LENGTH * Kc, Kc2)),                     # q conv2 w
                wspec((1, Kc2)),                                      # q conv2 b
                wspec((Kc2, Lo)),                                     # q sem w
                wspec((1, Lo)),                                       # q sem b
                wspec((FILTER_LENGTH * D, Kc)),                       # d conv1 w
                wspec((1, Kc)),                                       # d conv1 b
                wspec((FILTER_LENGTH * Kc, Kc2)),                     # d conv2 w
                wspec((1, Kc2)),                                      # d conv2 b
                wspec((Kc2, Lo)),                                     # d sem w
                wspec((1, Lo)),                                       # d sem b
                wspec((1, 1)),                                        # gamma w
                wspec((1, 1)),                                        # gamma b
            ],
            out_specs=pl.BlockSpec((nb, 1, jp1), lambda n: (n, 0, 0)),
        ),
        compiler_params=pltpu.CompilerParams(
            dimension_semantics=("parallel",)),
    )(q, pos, negs,
      qw1, params["q_b1"], qw2, params["q_b2"], params["q_ws"], params["q_bs"],
      dw1, params["d_b1"], dw2, params["d_b2"], params["d_ws"], params["d_bs"],
      gw, gb)
    return out.reshape(B, jp1)


# ----------------------------------------------------------------------------
# Pure-JAX reference (for correctness check)
# ----------------------------------------------------------------------------
def _ref_encode(x, w1, b1, w2, b2, ws, bs):
    def conv(h, w, b):
        T = h.shape[1]
        o = h[:, 0:T - 2] @ w[0] + h[:, 1:T - 1] @ w[1] + h[:, 2:T] @ w[2] + b
        return jnp.tanh(o)
    h1 = conv(x, w1, b1)
    h2 = conv(h1, w2, b2)
    pooled = jnp.max(h2, axis=1)
    return jnp.tanh(pooled @ ws + bs)


def _ref_forward(params, q, pos, negs):
    q_s = _ref_encode(q, params["q_w1"], params["q_b1"], params["q_w2"],
                      params["q_b2"], params["q_ws"], params["q_bs"])
    docs = jnp.concatenate([pos[None], negs], axis=0)
    doc_s = jnp.stack([_ref_encode(d, params["d_w1"], params["d_b1"],
                                   params["d_w2"], params["d_b2"],
                                   params["d_ws"], params["d_bs"])
                       for d in docs], axis=0)                        # (J+1, B, L)
    sims = jnp.einsum("bl,jbl->bj", q_s, doc_s)
    g = sims * params["gamma_w"][0] + params["gamma_b"][0]
    return jax.nn.softmax(g, axis=-1)


# ----------------------------------------------------------------------------
def init_params(key):
    ks = jax.random.split(key, 12)
    s = 0.05
    return {
        # query tower
        "q_w1": s * jax.random.normal(ks[0], (FILTER_LENGTH, WORD_DEPTH, K), jnp.float32),
        "q_b1": s * jax.random.normal(ks[1], (1, K), jnp.float32),
        "q_w2": s * jax.random.normal(ks[2], (FILTER_LENGTH, K, K2), jnp.float32),
        "q_b2": s * jax.random.normal(ks[3], (1, K2), jnp.float32),
        "q_ws": s * jax.random.normal(ks[4], (K2, L), jnp.float32),
        "q_bs": s * jax.random.normal(ks[5], (1, L), jnp.float32),
        # doc tower (shared for pos and all negs, as in the PyTorch module)
        "d_w1": s * jax.random.normal(ks[6], (FILTER_LENGTH, WORD_DEPTH, K), jnp.float32),
        "d_b1": s * jax.random.normal(ks[7], (1, K), jnp.float32),
        "d_w2": s * jax.random.normal(ks[8], (FILTER_LENGTH, K, K2), jnp.float32),
        "d_b2": s * jax.random.normal(ks[9], (1, K2), jnp.float32),
        "d_ws": s * jax.random.normal(ks[10], (K2, L), jnp.float32),
        "d_bs": s * jax.random.normal(ks[11], (1, L), jnp.float32),
        # learn_gamma = Conv1d(1,1,1): scalar weight + bias
        "gamma_w": jnp.array([1.5], jnp.float32),
        "gamma_b": jnp.array([0.1], jnp.float32),
    }


if __name__ == "__main__":
    B, T = 2, 8    # T must be >= 5 (two valid convs with filter length 3)

    key = jax.random.PRNGKey(0)
    kq, kp, kn, kparam = jax.random.split(key, 4)
    q = jax.random.normal(kq, (B, T, WORD_DEPTH), jnp.float32)
    pos = jax.random.normal(kp, (B, T, WORD_DEPTH), jnp.float32)
    negs = jax.random.normal(kn, (J, B, T, WORD_DEPTH), jnp.float32)

    params = init_params(kparam)

    fwd = jax.jit(functools.partial(cdssm_forward, params))
    probs = fwd(q, pos, negs)
    probs = jax.block_until_ready(probs)

    ref = _ref_forward(params, q, pos, negs)
    np.testing.assert_allclose(np.asarray(probs), np.asarray(ref),
                               rtol=1e-4, atol=1e-5)
    # rows must be valid softmax distributions over [pos, neg_0, neg_1]
    np.testing.assert_allclose(np.asarray(probs).sum(axis=-1),
                               np.ones(B), rtol=1e-5, atol=1e-5)

    print("KERNEL_OK")
</pallas_src>

<mosaic_0001>
module attributes {stable_mosaic.version = 11 : i64} {
  func.func @cdssm_kernel(%arg0: i32, %arg1: memref<1x8x128xf32, #tpu.memory_space<vmem>>, %arg2: memref<1x8x128xf32, #tpu.memory_space<vmem>>, %arg3: memref<2x1x8x128xf32, #tpu.memory_space<vmem>>, %arg4: memref<384x128xf32, #tpu.memory_space<vmem>>, %arg5: memref<1x128xf32, #tpu.memory_space<vmem>>, %arg6: memref<384x128xf32, #tpu.memory_space<vmem>>, %arg7: memref<1x128xf32, #tpu.memory_space<vmem>>, %arg8: memref<128x64xf32, #tpu.memory_space<vmem>>, %arg9: memref<1x64xf32, #tpu.memory_space<vmem>>, %arg10: memref<384x128xf32, #tpu.memory_space<vmem>>, %arg11: memref<1x128xf32, #tpu.memory_space<vmem>>, %arg12: memref<384x128xf32, #tpu.memory_space<vmem>>, %arg13: memref<1x128xf32, #tpu.memory_space<vmem>>, %arg14: memref<128x64xf32, #tpu.memory_space<vmem>>, %arg15: memref<1x64xf32, #tpu.memory_space<vmem>>, %arg16: memref<1x1xf32, #tpu.memory_space<vmem>>, %arg17: memref<1x1xf32, #tpu.memory_space<vmem>>, %arg18: memref<1x1x3xf32, #tpu.memory_space<vmem>>) attributes {dimension_semantics = [#tpu.dimension_semantics<parallel>], iteration_bounds = array<i64: 2>, scalar_prefetch = 0 : i64, scratch_operands = 0 : i64, tpu.core_type = #tpu.core_type<tc>, window_params = [{transform_indices = @transform_0, window_bounds = array<i64: 1, 8, 128>}, {transform_indices = @transform_1, window_bounds = array<i64: 1, 8, 128>}, {transform_indices = @transform_2, window_bounds = array<i64: 2, 1, 8, 128>}, {pipeline_mode = #tpu.pipeline_mode<synchronous>, transform_indices = @transform_3, window_bounds = array<i64: 384, 128>}, {pipeline_mode = #tpu.pipeline_mode<synchronous>, transform_indices = @transform_4, window_bounds = array<i64: 1, 128>}, {pipeline_mode = #tpu.pipeline_mode<synchronous>, transform_indices = @transform_5, window_bounds = array<i64: 384, 128>}, {pipeline_mode = #tpu.pipeline_mode<synchronous>, transform_indices = @transform_6, window_bounds = array<i64: 1, 128>}, {pipeline_mode = #tpu.pipeline_mode<synchronous>, transform_indices = @transform_7, window_bounds = array<i64: 128, 64>}, {pipeline_mode = #tpu.pipeline_mode<synchronous>, transform_indices = @transform_8, window_bounds = array<i64: 1, 64>}, {pipeline_mode = #tpu.pipeline_mode<synchronous>, transform_indices = @transform_9, window_bounds = array<i64: 384, 128>}, {pipeline_mode = #tpu.pipeline_mode<synchronous>, transform_indices = @transform_10, window_bounds = array<i64: 1, 128>}, {pipeline_mode = #tpu.pipeline_mode<synchronous>, transform_indices = @transform_11, window_bounds = array<i64: 384, 128>}, {pipeline_mode = #tpu.pipeline_mode<synchronous>, transform_indices = @transform_12, window_bounds = array<i64: 1, 128>}, {pipeline_mode = #tpu.pipeline_mode<synchronous>, transform_indices = @transform_13, window_bounds = array<i64: 128, 64>}, {pipeline_mode = #tpu.pipeline_mode<synchronous>, transform_indices = @transform_14, window_bounds = array<i64: 1, 64>}, {pipeline_mode = #tpu.pipeline_mode<synchronous>, transform_indices = @transform_15, window_bounds = array<i64: 1, 1>}, {pipeline_mode = #tpu.pipeline_mode<synchronous>, transform_indices = @transform_16, window_bounds = array<i64: 1, 1>}, {transform_indices = @transform_17, window_bounds = array<i64: 1, 1, 3>}]} {
    %c0 = arith.constant 0 : index
    %c0_0 = arith.constant 0 : index
    %c0_1 = arith.constant 0 : index
    %0 = vector.load %arg1[%c0, %c0_0, %c0_1] : memref<1x8x128xf32, #tpu.memory_space<vmem>>, vector<1x8x128xf32>
    %1 = vector.shape_cast %0 : vector<1x8x128xf32> to vector<8x128xf32>
    %2 = vector.extract_strided_slice %1 {offsets = [1, 0], sizes = [7, 128], strides = [1, 1]} : vector<8x128xf32> to vector<7x128xf32>
    %cst = arith.constant 0.000000e+00 : f32
    %3 = vector.broadcast %cst : f32 to vector<1x128xf32>
    %4 = tpu.concatenate %2, %3 in 0 : vector<7x128xf32>, vector<1x128xf32> -> vector<8x128xf32>
    %5 = vector.extract_strided_slice %1 {offsets = [2, 0], sizes = [6, 128], strides = [1, 1]} : vector<8x128xf32> to vector<6x128xf32>
    %cst_2 = arith.constant 0.000000e+00 : f32
    %6 = vector.broadcast %cst_2 : f32 to vector<2x128xf32>
    %7 = tpu.concatenate %5, %6 in 0 : vector<6x128xf32>, vector<2x128xf32> -> vector<8x128xf32>
    %8 = tpu.concatenate %1, %4, %7 in 1 : vector<8x128xf32>, vector<8x128xf32>, vector<8x128xf32> -> vector<8x384xf32>
    %c0_3 = arith.constant 0 : index
    %c0_4 = arith.constant 0 : index
    %9 = vector.load %arg4[%c0_3, %c0_4] : memref<384x128xf32, #tpu.memory_space<vmem>>, vector<384x128xf32>
    %cst_5 = arith.constant dense<0.000000e+00> : vector<8x128xf32>
    %10 = tpu.matmul %8, %9, %cst_5 {dimension_numbers = #tpu.dot_dimension_numbers<[1], [0], [0], [1], [0, 0, 1, 1], [], []>} : vector<8x384xf32>, vector<384x128xf32>, vector<8x128xf32> -> vector<8x128xf32>
    %c0_6 = arith.constant 0 : index
    %c0_7 = arith.constant 0 : index
    %11 = vector.load %arg5[%c0_6, %c0_7] : memref<1x128xf32, #tpu.memory_space<vmem>>, vector<1x128xf32>
    %12 = vector.broadcast %11 : vector<1x128xf32> to vector<8x128xf32>
    %13 = arith.addf %10, %12 : vector<8x128xf32>
    %14 = math.tanh %13 : vector<8x128xf32>
    %15 = vector.extract_strided_slice %14 {offsets = [1, 0], sizes = [7, 128], strides = [1, 1]} : vector<8x128xf32> to vector<7x128xf32>
    %cst_8 = arith.constant 0.000000e+00 : f32
    %16 = vector.broadcast %cst_8 : f32 to vector<1x128xf32>
    %17 = tpu.concatenate %15, %16 in 0 : vector<7x128xf32>, vector<1x128xf32> -> vector<8x128xf32>
    %18 = vector.extract_strided_slice %14 {offsets = [2, 0], sizes = [6, 128], strides = [1, 1]} : vector<8x128xf32> to vector<6x128xf32>
    %cst_9 = arith.constant 0.000000e+00 : f32
    %19 = vector.broadcast %cst_9 : f32 to vector<2x128xf32>
    %20 = tpu.concatenate %18, %19 in 0 : vector<6x128xf32>, vector<2x128xf32> -> vector<8x128xf32>
    %21 = tpu.concatenate %14, %17, %20 in 1 : vector<8x128xf32>, vector<8x128xf32>, vector<8x128xf32> -> vector<8x384xf32>
    %c0_10 = arith.constant 0 : index
    %c0_11 = arith.constant 0 : index
    %22 = vector.load %arg6[%c0_10, %c0_11] : memref<384x128xf32, #tpu.memory_space<vmem>>, vector<384x128xf32>
    %cst_12 = arith.constant dense<0.000000e+00> : vector<8x128xf32>
    %23 = tpu.matmul %21, %22, %cst_12 {dimension_numbers = #tpu.dot_dimension_numbers<[1], [0], [0], [1], [0, 0, 1, 1], [], []>} : vector<8x384xf32>, vector<384x128xf32>, vector<8x128xf32> -> vector<8x128xf32>
    %c0_13 = arith.constant 0 : index
    %c0_14 = arith.constant 0 : index
    %24 = vector.load %arg7[%c0_13, %c0_14] : memref<1x128xf32, #tpu.memory_space<vmem>>, vector<1x128xf32>
    %25 = vector.broadcast %24 : vector<1x128xf32> to vector<8x128xf32>
    %26 = arith.addf %23, %25 : vector<8x128xf32>
    %27 = math.tanh %26 : vector<8x128xf32>
    %28 = tpu.iota {dimensions = array<i32: 0>} : vector<8x128xi32>
    %c8_i32 = arith.constant 8 : i32
    %c0_i32 = arith.constant 0 : i32
    %29 = arith.cmpi eq, %c8_i32, %c0_i32 : i32
    %c1_i32 = arith.constant 1 : i32
    %30 = arith.select %29, %c1_i32, %c8_i32 : i32
    %31 = vector.broadcast %30 : i32 to vector<8x128xi32>
    %32 = arith.remsi %28, %31 : vector<8x128xi32>
    %c0_i32_15 = arith.constant 0 : i32
    %33 = vector.broadcast %c0_i32_15 : i32 to vector<8x128xi32>
    %34 = arith.cmpi ne, %32, %33 : vector<8x128xi32>
    %c0_i32_16 = arith.constant 0 : i32
    %35 = vector.broadcast %c0_i32_16 : i32 to vector<8x128xi32>
    %36 = arith.cmpi slt, %32, %35 : vector<8x128xi32>
    %c0_i32_17 = arith.constant 0 : i32
    %37 = arith.cmpi slt, %30, %c0_i32_17 : i32
    %38 = vector.broadcast %37 : i1 to vector<8x128xi1>
    %39 = vector.broadcast %38 : vector<8x128xi1> to vector<8x128xi1>
    %40 = arith.xori %36, %39 : vector<8x128xi1>
    %41 = arith.andi %40, %34 : vector<8x128xi1>
    %42 = vector.broadcast %30 : i32 to vector<8x128xi32>
    %43 = arith.addi %32, %42 : vector<8x128xi32>
    %44 = arith.select %41, %43, %32 : vector<8x128xi1>, vector<8x128xi32>
    %c4_i32 = arith.constant 4 : i32
    %45 = vector.broadcast %c4_i32 : i32 to vector<8x128xi32>
    %46 = arith.cmpi slt, %44, %45 : vector<8x128xi32>
    %cst_18 = arith.constant -2.000000e+00 : f32
    %47 = vector.broadcast %cst_18 : f32 to vector<8x128xf32>
    %48 = arith.select %46, %27, %47 : vector<8x128xi1>, vector<8x128xf32>
    %49 = vector.shape_cast %48 : vector<8x128xf32> to vector<1x8x128xf32>
    %cst_19 = arith.constant dense<0xFF800000> : vector<1x128xf32>
    %50 = vector.multi_reduction <maximumf>, %49, %cst_19 [1] : vector<1x8x128xf32> to vector<1x128xf32>
    %c0_20 = arith.constant 0 : index
    %c0_21 = arith.constant 0 : index
    %51 = vector.load %arg8[%c0_20, %c0_21] : memref<128x64xf32, #tpu.memory_space<vmem>>, vector<128x64xf32>
    %cst_22 = arith.constant dense<0.000000e+00> : vector<1x64xf32>
    %52 = tpu.matmul %50, %51, %cst_22 {dimension_numbers = #tpu.dot_dimension_numbers<[1], [0], [0], [1], [0, 0, 1, 1], [], []>} : vector<1x128xf32>, vector<128x64xf32>, vector<1x64xf32> -> vector<1x64xf32>
    %c0_23 = arith.constant 0 : index
    %c0_24 = arith.constant 0 : index
    %53 = vector.load %arg9[%c0_23, %c0_24] : memref<1x64xf32, #tpu.memory_space<vmem>>, vector<1x64xf32>
    %54 = arith.addf %52, %53 : vector<1x64xf32>
    %55 = math.tanh %54 : vector<1x64xf32>
    %c0_25 = arith.constant 0 : index
    %c0_26 = arith.constant 0 : index
    %c0_27 = arith.constant 0 : index
    %56 = vector.load %arg2[%c0_25, %c0_26, %c0_27] : memref<1x8x128xf32, #tpu.memory_space<vmem>>, vector<1x8x128xf32>
    %57 = vector.shape_cast %56 : vector<1x8x128xf32> to vector<8x128xf32>
    %c0_28 = arith.constant 0 : index
    %c0_29 = arith.constant 0 : index
    %c0_30 = arith.constant 0 : index
    %c0_31 = arith.constant 0 : index
    %58 = vector.load %arg3[%c0_28, %c0_29, %c0_30, %c0_31] : memref<2x1x8x128xf32, #tpu.memory_space<vmem>>, vector<1x1x8x128xf32>
    %59 = vector.shape_cast %58 : vector<1x1x8x128xf32> to vector<1x8x128xf32>
    %60 = vector.shape_cast %59 : vector<1x8x128xf32> to vector<8x128xf32>
    %c1 = arith.constant 1 : index
    %c0_32 = arith.constant 0 : index
    %c0_33 = arith.constant 0 : index
    %c0_34 = arith.constant 0 : index
    %61 = vector.load %arg3[%c1, %c0_32, %c0_33, %c0_34] : memref<2x1x8x128xf32, #tpu.memory_space<vmem>>, vector<1x1x8x128xf32>
    %62 = vector.shape_cast %61 : vector<1x1x8x128xf32> to vector<1x8x128xf32>
    %63 = vector.shape_cast %62 : vector<1x8x128xf32> to vector<8x128xf32>
    %64 = tpu.concatenate %57, %60, %63 in 0 : vector<8x128xf32>, vector<8x128xf32>, vector<8x128xf32> -> vector<24x128xf32>
    %65 = vector.extract_strided_slice %64 {offsets = [1, 0], sizes = [23, 128], strides = [1, 1]} : vector<24x128xf32> to vector<23x128xf32>
    %cst_35 = arith.constant 0.000000e+00 : f32
    %66 = vector.broadcast %cst_35 : f32 to vector<1x128xf32>
    %67 = tpu.concatenate %65, %66 in 0 : vector<23x128xf32>, vector<1x128xf32> -> vector<24x128xf32>
    %68 = vector.extract_strided_slice %64 {offsets = [2, 0], sizes = [22, 128], strides = [1, 1]} : vector<24x128xf32> to vector<22x128xf32>
    %cst_36 = arith.constant 0.000000e+00 : f32
    %69 = vector.broadcast %cst_36 : f32 to vector<2x128xf32>
    %70 = tpu.concatenate %68, %69 in 0 : vector<22x128xf32>, vector<2x128xf32> -> vector<24x128xf32>
    %71 = tpu.concatenate %64, %67, %70 in 1 : vector<24x128xf32>, vector<24x128xf32>, vector<24x128xf32> -> vector<24x384xf32>
    %c0_37 = arith.constant 0 : index
    %c0_38 = arith.constant 0 : index
    %72 = vector.load %arg10[%c0_37, %c0_38] : memref<384x128xf32, #tpu.memory_space<vmem>>, vector<384x128xf32>
    %cst_39 = arith.constant dense<0.000000e+00> : vector<24x128xf32>
    %73 = tpu.matmul %71, %72, %cst_39 {dimension_numbers = #tpu.dot_dimension_numbers<[1], [0], [0], [1], [0, 0, 1, 1], [], []>} : vector<24x384xf32>, vector<384x128xf32>, vector<24x128xf32> -> vector<24x128xf32>
    %c0_40 = arith.constant 0 : index
    %c0_41 = arith.constant 0 : index
    %74 = vector.load %arg11[%c0_40, %c0_41] : memref<1x128xf32, #tpu.memory_space<vmem>>, vector<1x128xf32>
    %75 = vector.broadcast %74 : vector<1x128xf32> to vector<24x128xf32>
    %76 = arith.addf %73, %75 : vector<24x128xf32>
    %77 = math.tanh %76 : vector<24x128xf32>
    %78 = vector.extract_strided_slice %77 {offsets = [1, 0], sizes = [23, 128], strides = [1, 1]} : vector<24x128xf32> to vector<23x128xf32>
    %cst_42 = arith.constant 0.000000e+00 : f32
    %79 = vector.broadcast %cst_42 : f32 to vector<1x128xf32>
    %80 = tpu.concatenate %78, %79 in 0 : vector<23x128xf32>, vector<1x128xf32> -> vector<24x128xf32>
    %81 = vector.extract_strided_slice %77 {offsets = [2, 0], sizes = [22, 128], strides = [1, 1]} : vector<24x128xf32> to vector<22x128xf32>
    %cst_43 = arith.constant 0.000000e+00 : f32
    %82 = vector.broadcast %cst_43 : f32 to vector<2x128xf32>
    %83 = tpu.concatenate %81, %82 in 0 : vector<22x128xf32>, vector<2x128xf32> -> vector<24x128xf32>
    %84 = tpu.concatenate %77, %80, %83 in 1 : vector<24x128xf32>, vector<24x128xf32>, vector<24x128xf32> -> vector<24x384xf32>
    %c0_44 = arith.constant 0 : index
    %c0_45 = arith.constant 0 : index
    %85 = vector.load %arg12[%c0_44, %c0_45] : memref<384x128xf32, #tpu.memory_space<vmem>>, vector<384x128xf32>
    %cst_46 = arith.constant dense<0.000000e+00> : vector<24x128xf32>
    %86 = tpu.matmul %84, %85, %cst_46 {dimension_numbers = #tpu.dot_dimension_numbers<[1], [0], [0], [1], [0, 0, 1, 1], [], []>} : vector<24x384xf32>, vector<384x128xf32>, vector<24x128xf32> -> vector<24x128xf32>
    %c0_47 = arith.constant 0 : index
    %c0_48 = arith.constant 0 : index
    %87 = vector.load %arg13[%c0_47, %c0_48] : memref<1x128xf32, #tpu.memory_space<vmem>>, vector<1x128xf32>
    %88 = vector.broadcast %87 : vector<1x128xf32> to vector<24x128xf32>
    %89 = arith.addf %86, %88 : vector<24x128xf32>
    %90 = math.tanh %89 : vector<24x128xf32>
    %91 = tpu.iota {dimensions = array<i32: 0>} : vector<24x128xi32>
    %c8_i32_49 = arith.constant 8 : i32
    %c0_i32_50 = arith.constant 0 : i32
    %92 = arith.cmpi eq, %c8_i32_49, %c0_i32_50 : i32
    %c1_i32_51 = arith.constant 1 : i32
    %93 = arith.select %92, %c1_i32_51, %c8_i32_49 : i32
    %94 = vector.broadcast %93 : i32 to vector<24x128xi32>
    %95 = arith.remsi %91, %94 : vector<24x128xi32>
    %c0_i32_52 = arith.constant 0 : i32
    %96 = vector.broadcast %c0_i32_52 : i32 to vector<24x128xi32>
    %97 = arith.cmpi ne, %95, %96 : vector<24x128xi32>
    %c0_i32_53 = arith.constant 0 : i32
    %98 = vector.broadcast %c0_i32_53 : i32 to vector<24x128xi32>
    %99 = arith.cmpi slt, %95, %98 : vector<24x128xi32>
    %c0_i32_54 = arith.constant 0 : i32
    %100 = arith.cmpi slt, %93, %c0_i32_54 : i32
    %101 = vector.broadcast %100 : i1 to vector<24x128xi1>
    %102 = vector.broadcast %101 : vector<24x128xi1> to vector<24x128xi1>
    %103 = arith.xori %99, %102 : vector<24x128xi1>
    %104 = arith.andi %103, %97 : vector<24x128xi1>
    %105 = vector.broadcast %93 : i32 to vector<24x128xi32>
    %106 = arith.addi %95, %105 : vector<24x128xi32>
    %107 = arith.select %104, %106, %95 : vector<24x128xi1>, vector<24x128xi32>
    %c4_i32_55 = arith.constant 4 : i32
    %108 = vector.broadcast %c4_i32_55 : i32 to vector<24x128xi32>
    %109 = arith.cmpi slt, %107, %108 : vector<24x128xi32>
    %cst_56 = arith.constant -2.000000e+00 : f32
    %110 = vector.broadcast %cst_56 : f32 to vector<24x128xf32>
    %111 = arith.select %109, %90, %110 : vector<24x128xi1>, vector<24x128xf32>
    %112 = vector.shape_cast %111 : vector<24x128xf32> to vector<3x8x128xf32>
    %cst_57 = arith.constant dense<0xFF800000> : vector<3x128xf32>
    %113 = vector.multi_reduction <maximumf>, %112, %cst_57 [1] : vector<3x8x128xf32> to vector<3x128xf32>
    %c0_58 = arith.constant 0 : index
    %c0_59 = arith.constant 0 : index
    %114 = vector.load %arg14[%c0_58, %c0_59] : memref<128x64xf32, #tpu.memory_space<vmem>>, vector<128x64xf32>
    %cst_60 = arith.constant dense<0.000000e+00> : vector<3x64xf32>
    %115 = tpu.matmul %113, %114, %cst_60 {dimension_numbers = #tpu.dot_dimension_numbers<[1], [0], [0], [1], [0, 0, 1, 1], [], []>} : vector<3x128xf32>, vector<128x64xf32>, vector<3x64xf32> -> vector<3x64xf32>
    %c0_61 = arith.constant 0 : index
    %c0_62 = arith.constant 0 : index
    %116 = vector.load %arg15[%c0_61, %c0_62] : memref<1x64xf32, #tpu.memory_space<vmem>>, vector<1x64xf32>
    %117 = vector.broadcast %116 : vector<1x64xf32> to vector<3x64xf32>
    %118 = arith.addf %115, %117 : vector<3x64xf32>
    %119 = math.tanh %118 : vector<3x64xf32>
    %120 = vector.shape_cast %119 : vector<3x64xf32> to vector<3x1x64xf32>
    %121 = vector.extract_strided_slice %120 {offsets = [0, 0, 0], sizes = [1, 1, 64], strides = [1, 1, 1]} : vector<3x1x64xf32> to vector<1x1x64xf32>
    %122 = vector.shape_cast %121 : vector<1x1x64xf32> to vector<1x64xf32>
    %123 = arith.mulf %55, %122 : vector<1x64xf32>
    %cst_63 = arith.constant dense<0.000000e+00> : vector<1xf32>
    %124 = vector.multi_reduction <add>, %123, %cst_63 [1] : vector<1x64xf32> to vector<1xf32>
    %125 = vector.shape_cast %124 : vector<1xf32> to vector<1x1xf32>
    %126 = vector.extract_strided_slice %120 {offsets = [1, 0, 0], sizes = [1, 1, 64], strides = [1, 1, 1]} : vector<3x1x64xf32> to vector<1x1x64xf32>
    %127 = vector.shape_cast %126 : vector<1x1x64xf32> to vector<1x64xf32>
    %128 = arith.mulf %55, %127 : vector<1x64xf32>
    %cst_64 = arith.constant dense<0.000000e+00> : vector<1xf32>
    %129 = vector.multi_reduction <add>, %128, %cst_64 [1] : vector<1x64xf32> to vector<1xf32>
    %130 = vector.shape_cast %129 : vector<1xf32> to vector<1x1xf32>
    %131 = vector.extract_strided_slice %120 {offsets = [2, 0, 0], sizes = [1, 1, 64], strides = [1, 1, 1]} : vector<3x1x64xf32> to vector<1x1x64xf32>
    %132 = vector.shape_cast %131 : vector<1x1x64xf32> to vector<1x64xf32>
    %133 = arith.mulf %55, %132 : vector<1x64xf32>
    %cst_65 = arith.constant dense<0.000000e+00> : vector<1xf32>
    %134 = vector.multi_reduction <add>, %133, %cst_65 [1] : vector<1x64xf32> to vector<1xf32>
    %135 = vector.shape_cast %134 : vector<1xf32> to vector<1x1xf32>
    %136 = tpu.concatenate %125, %130, %135 in 1 : vector<1x1xf32>, vector<1x1xf32>, vector<1x1xf32> -> vector<1x3xf32>
    %c0_66 = arith.constant 0 : index
    %c0_67 = arith.constant 0 : index
    %137 = vector.load %arg16[%c0_66, %c0_67] : memref<1x1xf32, #tpu.memory_space<vmem>>, vector<1x1xf32>
    %138 = vector.broadcast %137 : vector<1x1xf32> to vector<1x3xf32>
    %139 = arith.mulf %136, %138 : vector<1x3xf32>
    %c0_68 = arith.constant 0 : index
    %c0_69 = arith.constant 0 : index
    %140 = vector.load %arg17[%c0_68, %c0_69] : memref<1x1xf32, #tpu.memory_space<vmem>>, vector<1x1xf32>
    %141 = vector.broadcast %140 : vector<1x1xf32> to vector<1x3xf32>
    %142 = arith.addf %139, %141 : vector<1x3xf32>
    %cst_70 = arith.constant dense<0xFF800000> : vector<1xf32>
    %143 = vector.multi_reduction <maximumf>, %142, %cst_70 [1] : vector<1x3xf32> to vector<1xf32>
    %144 = vector.shape_cast %143 : vector<1xf32> to vector<1x1xf32>
    %145 = vector.broadcast %144 : vector<1x1xf32> to vector<1x3xf32>
    %146 = arith.subf %142, %145 : vector<1x3xf32>
    %147 = math.exp %146 : vector<1x3xf32>
    %cst_71 = arith.constant dense<0.000000e+00> : vector<1xf32>
    %148 = vector.multi_reduction <add>, %147, %cst_71 [1] : vector<1x3xf32> to vector<1xf32>
    %149 = vector.shape_cast %148 : vector<1xf32> to vector<1x1xf32>
    %150 = vector.broadcast %149 : vector<1x1xf32> to vector<1x3xf32>
    %151 = arith.divf %147, %150 : vector<1x3xf32>
    %152 = vector.shape_cast %151 : vector<1x3xf32> to vector<1x1x3xf32>
    %c0_72 = arith.constant 0 : index
    %c0_73 = arith.constant 0 : index
    %c0_74 = arith.constant 0 : index
    %153 = vector.load %arg18[%c0_72, %c0_73, %c0_74] : memref<1x1x3xf32, #tpu.memory_space<vmem>>, vector<1x1x3xf32>
    tpu.vector_store %arg18[%c0_72, %c0_73, %c0_74], %152 {strides = array<i32>} : memref<1x1x3xf32, #tpu.memory_space<vmem>>, vector<1x1x3xf32>,
    return
  }
  func.func @transform_0(%arg0: i32) -> (i32, i32, i32) {
    %c0_i32 = arith.constant 0 : i32
    %c0_i32_0 = arith.constant 0 : i32
    %c0_i32_1 = arith.constant 0 : i32
    return %arg0, %c0_i32, %c0_i32_0 : i32, i32, i32
  }
  func.func @transform_1(%arg0: i32) -> (i32, i32, i32) {
    %c0_i32 = arith.constant 0 : i32
    %c0_i32_0 = arith.constant 0 : i32
    %c0_i32_1 = arith.constant 0 : i32
    return %arg0, %c0_i32, %c0_i32_0 : i32, i32, i32
  }
  func.func @transform_2(%arg0: i32) -> (i32, i32, i32, i32) {
    %c0_i32 = arith.constant 0 : i32
    %c0_i32_0 = arith.constant 0 : i32
    %c0_i32_1 = arith.constant 0 : i32
    %c0_i32_2 = arith.constant 0 : i32
    return %c0_i32, %arg0, %c0_i32_0, %c0_i32_1 : i32, i32, i32, i32
  }
  func.func @transform_3(%arg0: i32) -> (i32, i32) {
    %c0_i32 = arith.constant 0 : i32
    %c0_i32_0 = arith.constant 0 : i32
    %c0_i32_1 = arith.constant 0 : i32
    return %c0_i32, %c0_i32_0 : i32, i32
  }
  func.func @transform_4(%arg0: i32) -> (i32, i32) {
    %c0_i32 = arith.constant 0 : i32
    %c0_i32_0 = arith.constant 0 : i32
    %c0_i32_1 = arith.constant 0 : i32
    return %c0_i32, %c0_i32_0 : i32, i32
  }
  func.func @transform_5(%arg0: i32) -> (i32, i32) {
    %c0_i32 = arith.constant 0 : i32
    %c0_i32_0 = arith.constant 0 : i32
    %c0_i32_1 = arith.constant 0 : i32
    return %c0_i32, %c0_i32_0 : i32, i32
  }
  func.func @transform_6(%arg0: i32) -> (i32, i32) {
    %c0_i32 = arith.constant 0 : i32
    %c0_i32_0 = arith.constant 0 : i32
    %c0_i32_1 = arith.constant 0 : i32
    return %c0_i32, %c0_i32_0 : i32, i32
  }
  func.func @transform_7(%arg0: i32) -> (i32, i32) {
    %c0_i32 = arith.constant 0 : i32
    %c0_i32_0 = arith.constant 0 : i32
    %c0_i32_1 = arith.constant 0 : i32
    return %c0_i32, %c0_i32_0 : i32, i32
  }
  func.func @transform_8(%arg0: i32) -> (i32, i32) {
    %c0_i32 = arith.constant 0 : i32
    %c0_i32_0 = arith.constant 0 : i32
    %c0_i32_1 = arith.constant 0 : i32
    return %c0_i32, %c0_i32_0 : i32, i32
  }
  func.func @transform_9(%arg0: i32) -> (i32, i32) {
    %c0_i32 = arith.constant 0 : i32
    %c0_i32_0 = arith.constant 0 : i32
    %c0_i32_1 = arith.constant 0 : i32
    return %c0_i32, %c0_i32_0 : i32, i32
  }
  func.func @transform_10(%arg0: i32) -> (i32, i32) {
    %c0_i32 = arith.constant 0 : i32
    %c0_i32_0 = arith.constant 0 : i32
    %c0_i32_1 = arith.constant 0 : i32
    return %c0_i32, %c0_i32_0 : i32, i32
  }
  func.func @transform_11(%arg0: i32) -> (i32, i32) {
    %c0_i32 = arith.constant 0 : i32
    %c0_i32_0 = arith.constant 0 : i32
    %c0_i32_1 = arith.constant 0 : i32
    return %c0_i32, %c0_i32_0 : i32, i32
  }
  func.func @transform_12(%arg0: i32) -> (i32, i32) {
    %c0_i32 = arith.constant 0 : i32
    %c0_i32_0 = arith.constant 0 : i32
    %c0_i32_1 = arith.constant 0 : i32
    return %c0_i32, %c0_i32_0 : i32, i32
  }
  func.func @transform_13(%arg0: i32) -> (i32, i32) {
    %c0_i32 = arith.constant 0 : i32
    %c0_i32_0 = arith.constant 0 : i32
    %c0_i32_1 = arith.constant 0 : i32
    return %c0_i32, %c0_i32_0 : i32, i32
  }
  func.func @transform_14(%arg0: i32) -> (i32, i32) {
    %c0_i32 = arith.constant 0 : i32
    %c0_i32_0 = arith.constant 0 : i32
    %c0_i32_1 = arith.constant 0 : i32
    return %c0_i32, %c0_i32_0 : i32, i32
  }
  func.func @transform_15(%arg0: i32) -> (i32, i32) {
    %c0_i32 = arith.constant 0 : i32
    %c0_i32_0 = arith.constant 0 : i32
    %c0_i32_1 = arith.constant 0 : i32
    return %c0_i32, %c0_i32_0 : i32, i32
  }
  func.func @transform_16(%arg0: i32) -> (i32, i32) {
    %c0_i32 = arith.constant 0 : i32
    %c0_i32_0 = arith.constant 0 : i32
    %c0_i32_1 = arith.constant 0 : i32
    return %c0_i32, %c0_i32_0 : i32, i32
  }
  func.func @transform_17(%arg0: i32) -> (i32, i32, i32) {
    %c0_i32 = arith.constant 0 : i32
    %c0_i32_0 = arith.constant 0 : i32
    %c0_i32_1 = arith.constant 0 : i32
    return %arg0, %c0_i32, %c0_i32_0 : i32, i32, i32
  }
}

</mosaic_0001>

<bundles_post_ra>
// kernel: cdssm_forward.1
= control target key start
LH: loop header
LB: loop body
LE: loop exit
PB: predicated region body
PF: predicated region fallthrough
CT: control target
= control target key end

     0   :  { %s2933_s0 = inlined_call_operand.hbm [shape: f32[2,8,128], index: 0, kind: input, shape index: {}]   ;;  %s2934_s1 = inlined_call_operand.hbm [shape: f32[2,8,128], index: 1, kind: input, shape index: {}]   ;;  %s2935_s2 = inlined_call_operand.hbm [shape: f32[2,2,8,128], index: 2, kind: input, shape index: {}]   ;;  %s2936_s3 = inlined_call_operand.hbm [shape: f32[384,128], index: 3, kind: input, shape index: {}]   ;;  %s2937_s4 = inlined_call_operand.hbm [shape: f32[1,128], index: 4, kind: input, shape index: {}]   ;;  %s2938_s5 = inlined_call_operand.hbm [shape: f32[384,128], index: 5, kind: input, shape index: {}]   ;;  %s2939_s6 = inlined_call_operand.hbm [shape: f32[1,128], index: 6, kind: input, shape index: {}]   ;;  %s2940_s7 = inlined_call_operand.hbm [shape: f32[128,64], index: 7, kind: input, shape index: {}]   ;;  %s2941_s8 = inlined_call_operand.vmem [shape: f32[1,64], index: 8, kind: input, shape index: {}]   ;;  %s2942_s9 = inlined_call_operand.hbm [shape: f32[384,128], index: 9, kind: input, shape index: {}]   ;;  %s2943_s10 = inlined_call_operand.vmem [shape: f32[1,128], index: 10, kind: input, shape index: {}]   ;;  %s2944_s11 = inlined_call_operand.hbm [shape: f32[384,128], index: 11, kind: input, shape index: {}]   ;;  %s2945_s12 = inlined_call_operand.vmem [shape: f32[1,128], index: 12, kind: input, shape index: {}]   ;;  %s2946_s13 = inlined_call_operand.hbm [shape: f32[128,64], index: 13, kind: input, shape index: {}]   ;;  %s2947_s14 = inlined_call_operand.vmem [shape: f32[1,64], index: 14, kind: input, shape index: {}]   ;;  %s2948_s15 = inlined_call_operand.<no memory space> [shape: f32[1,1], index: 15, kind: input, shape index: {}]   ;;  %s2949_s17 = inlined_call_operand.hbm [shape: f32[2,1,3], index: 17, kind: output, shape index: {}]   ;;  %s2950_s16 = inlined_call_operand.<no memory space> [shape: f32[1,1], index: 16, kind: input, shape index: {}]  }
   0x1   :  { %2971 = sst [smem:[#allocation38_spill]] %s2933_s0  ;;  %v22_v0 = vstv %s2948_s15  ;;  %v24_v1 = vstv %s2950_s16 }
   0x2   :  { %2972 = sst [smem:[#allocation39_spill]] %s2934_s1  ;;  %23 = vst [vmem:[#allocation2] sm:$0x1] %v22_v0 }
   0x3   :  { %2973 = sst [smem:[#allocation40_spill]] %s2936_s3  ;;  %25 = vst [vmem:[#allocation3] sm:$0x1] %v24_v1 }
   0x4   :  { %2974 = sst [smem:[#allocation41_spill]] %s2937_s4 }
   0x5   :  { %2975 = sst [smem:[#allocation42_spill]] %s2938_s5 }
   0x6   :  { %2976 = sst [smem:[#allocation43_spill]] %s2939_s6 }
   0x7   :  { %2977 = sst [smem:[#allocation44_spill]] %s2940_s7 }
   0x8   :  { %2978 = sst [smem:[#allocation45_spill]] %s2944_s11 }
   0x9   :  { %2979 = sst [smem:[#allocation46_spill]] %s2947_s14 }
   0xa   :  { %2980 = sst [smem:[#allocation47_spill]] %s2949_s17 }
   0xb   :  { %26 = vsyncpa [#allocation5], 0 }
   0xc   :  { %28 = vsyncpa [#allocation5 + $0x1], 0 }
   0xd   :  { %29 = vsyncpa [#allocation8], 0 }
   0xe   :  { %31 = vsyncpa [#allocation8 + $0x1], 0 }
   0xf   :  { %32 = vsyncpa [#allocation11], 0 }
  0x10   :  { %33 = vsyncpa [#allocation14], 0 }
  0x11   :  { %34 = vsyncpa [#allocation17], 0 }
  0x12   :  { %35 = vsyncpa [#allocation20], 0 }
  0x13   :  { %36 = vsyncpa [#allocation6], 0 }
  0x14   :  { %38 = vsyncpa [#allocation6 + $0x1], 0  ;;  %s2520_s28 = smov 0   ;;  %s2522_s29 = smov 0  }
  0x15   :  { %s2524_s15 = smov 0   ;;  %s2526_s0 = smov 0  }
  0x16 LB: > { %2981 = sst [smem:[#allocation30_spill]] %s2398_s28  ;;  %s2544_s19 = sadd.s32 4294967295, %s2410_s0   ;;  %s2410_s0 = sphi %s2526_s0, %s3026_s0   ;;  %s2406_s15 = sphi %s2524_s15, %s3028_s15   ;;  %s2402_s29 = sphi %s2522_s29, %s3030_s29   ;;  %s2398_s28 = sphi %s2520_s28, %s3029_s28  }
  0x17   : > { %2982 = sst [smem:[#allocation31_spill]] %s2406_s15  ;;  %p1750_p0 = scmp.ge.s32.totalorder %s2410_s0, 1 }
  0x18   : > { %2983 = sst [smem:[#allocation32_spill]] %s2410_s0  ;;  %p2965_p1 = scmp.eq.s32.totalorder %s2544_s19, 0 }
  0x19   : > { %s2984_s3 = sld [smem:[#allocation40_spill]]  ;;  %p447_p2 = scmp.lt.s32.totalorder %s2410_s0, 3 }
  0x1a   : > { %s2412_s20 = smov [#allocation10]   ;;  %s2986_s5 = sld [smem:[#allocation42_spill]] }
  0x1b   : > { %p2549_p3 = pnand %p1750_p0, %p447_p2  ;;  %s460_s21 = sshll.u32 %s2412_s20, 4  ;;  %s461_s21 = int_to_ptr.vmem [resolvable:$true] %s460_s21 }
  0x1c   : > { %s2988_s7 = sld [smem:[#allocation44_spill]]  ;;  %s2413_s30 = smov [#allocation13]  }
  0x1d   : > { %p1861_p4 = pneg %p2549_p3  ;;  %s486_s20 = sshll.u32 %s2413_s30, 4  ;;  %s487_s20 = int_to_ptr.vmem [resolvable:$true] %s486_s20 }
  0x1e   : > { %s2955_s22 = smov 8   ;;  %s2989_s11 = sld [smem:[#allocation45_spill]] }
  0x1f   : > { %s458_s18 = sshll.u32 %s2984_s3, 4  ;;  %p2561_p6 = pnand %p1861_p4, %p2965_p1  ;;  %s459_s18 = int_to_ptr.hbm [resolvable:$true] %s458_s18 }
  0x20   : > { %s484_s24 = sshll.u32 %s2986_s5, 4  ;;  %s2953_s3 = smov 128   ;;  %s485_s24 = int_to_ptr.hbm [resolvable:$true] %s484_s24 }
  0x21   : > { %1864 = dma.hbm_to_vmem [thread:$0]  (!%p2561_p6), %s459_s18, 6144, %s461_s21, [#allocation11], %s2953_s3, %s2953_s3, %s2955_s22  }
  0x22   : > { %s510_s16 = sshll.u32 %s2988_s7, 4  ;;  %s2416_s30 = smov [#allocation16]   ;;  %s511_s16 = int_to_ptr.hbm [resolvable:$true] %s510_s16 }
  0x23   : > { %1870 = dma.hbm_to_vmem [thread:$0]  (!%p2561_p6), %s485_s24, 6144, %s487_s20, [#allocation14], %s2953_s3, %s2953_s3, %s2955_s22  }
  0x24   : > { %s544_s27 = sshll.u32 %s2989_s11, 4  ;;  %s512_s18 = sshll.u32 %s2416_s30, 4  ;;  %s545_s27 = int_to_ptr.hbm [resolvable:$true] %s544_s27  ;;  %s513_s18 = int_to_ptr.vmem [resolvable:$true] %s512_s18 }
  0x25   : > { %1876 = dma.hbm_to_vmem [thread:$0]  (!%p2561_p6), %s511_s16, 2048, %s513_s18, [#allocation17], %s2953_s3, %s2953_s3, %s2955_s22  }
  0x26   : > { %s2417_s21 = smov [#allocation19]   ;;  %s1749_s20 = sadd.s32 4294967294, %s2410_s0  }
  0x27   : > { %s546_s24 = sshll.u32 %s2417_s21, 4  ;;  %s2593_s23 = sadd.s32 1, %s2410_s0   ;;  %s547_s24 = int_to_ptr.vmem [resolvable:$true] %s546_s24 }
  0x28   : > { %1882 = dma.hbm_to_vmem [thread:$0]  (!%p2561_p6), %s545_s27, 6144, %s547_s24, [#allocation20], %s2953_s3, %s2953_s3, %s2955_s22  }
  0x29   : > { %2990 = sst [smem:[#allocation33_spill]] %s2593_s23  ;;  %s48_s26 = ssub.s32 %s2410_s0, %s2593_s23 }
  0x2a   : > { %s51_s30 = sadd.s32 1, %s2406_s15  ;;  %p49_p7 = scmp.eq.s32.totalorder %s48_s26, 0 }
  0x2b   : > { %p58_p8 = scmp.ne.s32.totalorder %s2406_s15, %s2402_s29  ;;  %p59_p9 = scmp.eq.s32.totalorder %s2410_s0, 0 }
  0x2c   : > { %p64_p10 = scmp.ne.s32.totalorder %s2402_s29, %s2398_s28  ;;  %p434_p13 = scmp.eq.s32.totalorder %s2544_s19, 1 }
  0x2d   : > { %s2604_s16 = scalar_select %p49_p7, %s2406_s15, %s51_s30  }
  0x2e   : > { %p60_p11 = por %p59_p9, %p58_p8  ;;  %p2608_p12 = por %p2965_p1, %p64_p10 }
  0x2f   : > { %2991 = sst [smem:[#allocation34_spill]] %s2604_s16  ;;  %p440_p0 = scmp.eq.s32.totalorder %s1749_s20, 1 }
  0x30   : > { %p1908_p2 = scmp.lt.s32.totalorder %s2410_s0, 2  ;;  %s2615_s27 = sand.u32 1, %s2406_s15  }
  0x31   : > { %p2617_p4 = por %p434_p13, %p58_p8  ;;  %p2621_p5 = por %p440_p0, %p64_p10 }
  0x32   : > { %s2964_s26 = sshll.u32 %s2615_s27, 3  ;;  %s2627_s30 = sshll.u32 %s2410_s0, 3 }
  0x33   : > { %s2993_s21 = scalar_select %p2617_p4, 1, 0 }
  0x34   : > { %s2995_s24 = scalar_select %p2621_p5, 1, 0 }
  0x35   : > { %2994 = sst [smem:[#allocation35_spill]] %s2993_s21  ;;  %p2629_p7 = pnand %p1908_p2, %p60_p11 }
  0x36   : > { %2996 = sst [smem:[#allocation36_spill]] %s2995_s24  ;;  %s605_s20 = sand.u32 1, %s2410_s0  }
  0x37   : > { %s2998_s7 = sld [smem:[#allocation39_spill]]  ;;  %s609_s15 = scalar_lea.vmem [#allocation7], %s2964_s26 }
  0x38   : > { %s617_s23 = sshll.u32 %s609_s15, 4  ;;  %s2640_s24 = scalar_lea.sflag [#allocation8], %s605_s20  ;;  %s618_s23 = int_to_ptr.vmem [resolvable:$true] %s617_s23 }
  0x39   : > { %p2118_p9 = pneg %p2629_p7 }
  0x3d   : > { %s613_s11 = scalar_lea.hbm %s2998_s7, %s2627_s30 }
  0x3e   : > { %s615_s16 = sshll.u32 %s613_s11, 4  ;;  %s2121_s11 = scalar_lea.hbm %s2998_s7, 16  ;;  %s616_s16 = int_to_ptr.hbm [resolvable:$true] %s615_s16 }
  0x3f   : > { %s2114_s28 = sshra.s32 %s616_s16, 4  ;;  %s2115_s28 = int_to_ptr.hbm [resolvable:$true] %s2114_s28 }
  0x40   : > { %s2116_s21 = scalar_lea.hbm %s2115_s28, 8  ;;  %p2122_p13 = scmp.lt.s32.totalorder %s2115_s28, %s2998_s7 }
  0x41   : > { %p2117_p8 = scmp.ne.s32.totalorder %s2115_s28, %s2116_s21  ;;  %p2123_p0 = scmp.lt.s32.totalorder %s2121_s11, %s2116_s21 }
  0x43   : > { %p2119_p10 = pnand %p2118_p9, %p2117_p8  ;;  %p2124_p2 = por %p2123_p0, %p2122_p13 }
  0x45   : > { %p2120_p11 = pneg %p2119_p10 }
  0x47   : > { %p2125_p1 = pnand %p2124_p2, %p2120_p11 }
  0x49   : > { %2128 = shalt.err (!%p2125_p1)
}
  0x4a   : > { %1892 = dma.hbm_to_vmem [thread:$0]  (!%p2629_p7), %s616_s16, 128, %s618_s23, %s2640_s24  }
  0x4b   : > { %s1764_s20 = sshll.u32 %s2615_s27, 4  ;;  %s632_s5 = scalar_lea.hbm %s2935_s2, %s2627_s30 }
  0x4c   : > { %s2661_s22 = sshll.u32 %s632_s5, 4  ;;  %s628_s28 = scalar_lea.vmem [#allocation9], %s1764_s20 }
  0x4d   : > { %2999 = sst [smem:[#allocation37_spill]] %s2661_s22  ;;  %s635_s21 = sshll.u32 %s628_s28, 4  ;;  %s2664_s21 = int_to_ptr.vmem [resolvable:$true] %s635_s21 }
  0x4e   : > { %s3000_s4 = sld [smem:[#allocation41_spill]]  ;;  %s2418_s23 = smov [#allocation12]  }
  0x4f   : > { %s475_s16 = sshll.u32 %s2418_s23, 4  ;;  %s3001_s6 = sld [smem:[#allocation43_spill]]  ;;  %s476_s16 = int_to_ptr.vmem [resolvable:$true] %s475_s16 }
  0x50   : > { %s527_s5 = sshll.u32 %s2942_s9, 4  ;;  %s2419_s28 = smov [#allocation15]   ;;  %s528_s5 = int_to_ptr.hbm [resolvable:$true] %s527_s5 }
  0x51   : > { %s501_s26 = sshll.u32 %s2419_s28, 4  ;;  %s2420_s7 = smov [#allocation18]   ;;  %s502_s26 = int_to_ptr.vmem [resolvable:$true] %s501_s26 }
  0x52   : > { %s529_s14 = sshll.u32 %s2420_s7, 4  ;;  %s3003_s0 = smov 128   ;;  %s530_s14 = int_to_ptr.vmem [resolvable:$true] %s529_s14 }
  0x53   : > { %s2421_s20 = smov [#allocation21]   ;;  %s3005_s11 = sshll.u32 %s2615_s27, 3 }
  0x54   : > { %s473_s15 = sshll.u32 %s3000_s4, 4  ;;  %s563_s28 = sshll.u32 %s2421_s20, 4  ;;  %s474_s15 = int_to_ptr.hbm [resolvable:$true] %s473_s15  ;;  %s564_s28 = int_to_ptr.vmem [resolvable:$true] %s563_s28 }
  0x55   : > { %s499_s17 = sshll.u32 %s3001_s6, 4  ;;  %s590_s23 = scalar_lea.vmem [#allocation4], %s3005_s11  ;;  %s500_s17 = int_to_ptr.hbm [resolvable:$true] %s499_s17 }
  0x56   : > { %1867 = dma.hbm_to_vmem [thread:$0]  (!%p2561_p6), %s474_s15, 16, %s476_s16, [#allocation11]  }
  0x57   : > { %1873 = dma.hbm_to_vmem [thread:$0]  (!%p2561_p6), %s500_s17, 16, %s502_s26, [#allocation14]  }
  0x58   : > { %s561_s15 = sshll.u32 %s2946_s13, 4  ;;  %s3002_s16 = smov 8   ;;  %s562_s15 = int_to_ptr.hbm [resolvable:$true] %s561_s15 }
  0x59   : > { %1879 = dma.hbm_to_vmem [thread:$0]  (!%p2561_p6), %s528_s5, 6144, %s530_s14, [#allocation17], %s3003_s0, %s3003_s0, %s3002_s16  }
  0x5a   : > { %s3004_s26 = sld [smem:[#allocation38_spill]]  ;;  %s598_s6 = sshll.u32 %s590_s23, 4  ;;  %s599_s6 = int_to_ptr.vmem [resolvable:$true] %s598_s6 }
  0x5b   : > { %1885 = dma.hbm_to_vmem [thread:$0]  (!%p2561_p6), %s562_s15, 2048, %s564_s28, [#allocation20], %s3003_s0, %s3003_s0, %s3002_s16  }
  0x5c   : > { %s587_s5 = scalar_lea.sflag [#allocation5], %s2615_s27 }
  0x60   : > { %s594_s4 = scalar_lea.hbm %s3004_s26, %s2627_s30  ;;  %s2271_s22 = scalar_lea.hbm %s3004_s26, 16 }
  0x61   : > { %s596_s7 = sshll.u32 %s594_s4, 4  ;;  %s597_s7 = int_to_ptr.hbm [resolvable:$true] %s596_s7 }
  0x62   : > { %s2264_s14 = sshra.s32 %s597_s7, 4  ;;  %s2265_s14 = int_to_ptr.hbm [resolvable:$true] %s2264_s14 }
  0x63   : > { %s2266_s20 = scalar_lea.hbm %s2265_s14, 8  ;;  %p2272_p6 = scmp.lt.s32.totalorder %s2265_s14, %s3004_s26 }
  0x64   : > { %p2267_p1 = scmp.ne.s32.totalorder %s2265_s14, %s2266_s20  ;;  %p2273_p11 = scmp.lt.s32.totalorder %s2271_s22, %s2266_s20 }
  0x66   : > { %p2269_p8 = pnand %p2267_p1, %p2118_p9  ;;  %p2274_p13 = por %p2273_p11, %p2272_p6 }
  0x68   : > { %p2270_p10 = pneg %p2269_p8 }
  0x6a   : > { %p2275_p0 = pnand %p2274_p13, %p2270_p10 }
  0x6c   : > { %2278 = shalt.err (!%p2275_p0)
}
  0x6d   : > { %s3006_s27 = sld [smem:[#allocation37_spill]]  ;;  %s2301_s20 = scalar_lea.hbm %s2935_s2, 32 }
  0x6e   : > { %1889 = dma.hbm_to_vmem [thread:$0]  (!%p2629_p7), %s597_s7, 128, %s599_s6, %s587_s5  }
  0x73   : > { %s3007_s28 = int_to_ptr.hbm [resolvable:$true] %s3006_s27 }
  0x74   : > { %s2294_s17 = sshra.s32 %s3007_s28, 4  ;;  %s2295_s17 = int_to_ptr.hbm [resolvable:$true] %s2294_s17 }
  0x75   : > { %s2296_s11 = scalar_lea.hbm %s2295_s17, 16  ;;  %p2302_p10 = scmp.lt.s32.totalorder %s2295_s17, %s2935_s2 }
  0x76   : > { %p2297_p2 = scmp.ne.s32.totalorder %s2295_s17, %s2296_s11  ;;  %p2303_p6 = scmp.lt.s32.totalorder %s2301_s20, %s2296_s11 }
  0x78   : > { %p2299_p1 = pnand %p2297_p2, %p2118_p9  ;;  %p2304_p11 = por %p2303_p6, %p2302_p10 }
  0x7a   : > { %p2300_p8 = pneg %p2299_p1 }
  0x7c   : > { %p2305_p13 = pnand %p2304_p11, %p2300_p8 }
  0x7e   : > { %2308 = shalt.err (!%p2305_p13)
}
  0x7f   : > { %s2422_s6 = smov 256   ;;  %s3008_s7 = smov %s3007_s28 }
  0x80   : > { %1895 = dma.hbm_to_vmem [thread:$0]  (!%p2629_p7), %s3008_s7, 256, %s2664_s21, %s2640_s24, %s2422_s6, %s3003_s0, %s3002_s16  }
  0x81   : > { %647 = sbr.rel (%p2549_p3) target bundleno = 1223 (0x4c7), region = 88  ;;  %s2732_s5 = sand.u32 (!%p2549_p3), 1, %s2402_s29  }
  0x82   : > { %s1767_s22 = sshll.u32 (!%p2549_p3), %s2732_s5, 3  ;;  %s650_s15 = scalar_lea.sflag (!%p2549_p3), [#allocation5], %s2732_s5 }
  0x83   : > { %s2736_s4 = scalar_lea.vmem (!%p2549_p3), [#allocation4], %s1767_s22 }
  0x86   : > { %2369 = dma.done.wait (%p2608_p12), %s650_s15, 128  }
  0x87   : > { %2371 = vsyncadd (%p2608_p12), %s650_s15, 4294967168  ;;  %s659_s3 = sand.u32 1, %s2544_s19   ;;  %s2743_s24 = scalar_lea.vmem [#allocation7], %s1767_s22 }
  0x88   : > { %s660_s1 = scalar_lea.sflag [#allocation8], %s659_s3 }
  0x89   : > { %2373 = dma.done.wait (%p2608_p12), %s660_s1, 384  }
  0x8a   : > { %2375 = vsyncadd (%p2608_p12), %s660_s1, 4294966912  ;;  %s1769_s21 = sshll.u32 %s2732_s5, 4  ;;  %p3009_p3 = scmp.eq.s32.totalorder %s2544_s19, 0 }
  0x8b   : > { %s2750_s16 = scalar_lea.vmem [#allocation9], %s1769_s21 }
  0x8c   : > { %2377 = dma.done.wait (%p3009_p3), [#allocation11], 6160   ;;  %p3010_p7 = pmov %p3009_p3 }
  0x8d   : > { %p3011_p9 = pmov %p3009_p3 }
  0x8e   : > { %2379 = vsyncadd (%p3010_p7), [#allocation11], 4294961136 }
  0x8f   : > { %2381 = dma.done.wait (%p3011_p9), [#allocation14], 6160   ;;  %p3012_p0 = pmov %p3009_p3 }
  0x91   : > { %2383 = vsyncadd (%p3012_p0), [#allocation14], 4294961136  ;;  %p3013_p2 = pmov %p3012_p0 }
  0x92   : > { %p3014_p12 = pmov %p3012_p0 }
  0x93   : > { %2385 = dma.done.wait (%p3013_p2), [#allocation17], 8192  }
  0x94   : > { %2387 = vsyncadd (%p3014_p12), [#allocation17], 4294959104  ;;  %p3015_p1 = pmov %p3012_p0 }
  0x95   : > { %p3016_p8 = pmov %p3012_p0 }
  0x96   : > { %2389 = dma.done.wait (%p3015_p1), [#allocation20], 8192  }
  0x97   : > { %2391 = vsyncadd (%p3016_p8), [#allocation20], 4294959104  ;;  %v831_v2 = vld [vmem:[#allocation10 + $0x178] sm:$0xff]  ;;  %v830_v4 = vld [vmem:[#allocation10 + $0x170] sm:$0xff]  ;;  %vm782_vm0 = vcmask 1045504   ;;  %vm778_vm1 = vcmask 1046528  }
  0x98   : > { %v799_v3 = vld [vmem:[#allocation10 + $0x78] sm:$0xff]  ;;  %876 = vmatpush.msra.mxu2 %v831_v2  ;;  %v798_v5 = vld [vmem:[#allocation10 + $0x70] sm:$0xff]  ;;  %v829_v7 = vld [vmem:[#allocation10 + $0x168] sm:$0xff]  ;;  %vm1461_vm5 = vcmask 1041409   ;;  %vm1463_vm6 = vcmask 1042434   ;;  %s3019_s20 = sld [smem:[#allocation46_spill]] }
  0x99   : > { %836 = vmatpush.msra.mxu0 %v799_v3  ;;  %v815_v6 = vld [vmem:[#allocation10 + $0xf8] sm:$0xff]  ;;  %v797_v8 = vld [vmem:[#allocation10 + $0x68] sm:$0xff]  ;;  %v814_v9 = vld [vmem:[#allocation10 + $0xf0] sm:$0xff]  ;;  %vm1488_vm7 = vcmask 516096   ;;  %vm1505_vm8 = vcmask 7168   ;;  %vm1507_vm9 = vcmask 15360  }
  0x9a   : > { %856 = vmatpush.msra.mxu1 %v815_v6  ;;  %877 = vmatpush.msra.mxu2 %v830_v4  ;;  %v813_v10 = vld [vmem:[#allocation10 + $0xe8] sm:$0xff]  ;;  %v828_v11 = vld [vmem:[#allocation10 + $0x160] sm:$0xff]  ;;  %v827_v14 = vld [vmem:[#allocation10 + $0x158] sm:$0xff]  ;;  %vm1525_vm10 = vcmask 16384   ;;  %s3020_s6 = sld [smem:[#allocation47_spill]]  ;;  %s773_s15 = scalar_lea.vmem [#allocation22], %s2732_s5 }
  0x9b   : > { %837 = vmatpush.msra.mxu0 %v798_v5  ;;  %v796_v12 = vld [vmem:[#allocation10 + $0x60] sm:$0xff]  ;;  %v795_v15 = vld [vmem:[#allocation10 + $0x58] sm:$0xff]  ;;  %v826_v17 = vld [vmem:[#allocation10 + $0x150] sm:$0xff]  ;;  %s1552_s1 = scalar_lea.sflag [#allocation6], %s2732_s5 }
  0x9c   : > { %857 = vmatpush.msra.mxu1 %v814_v9  ;;  %878 = vmatpush.msra.mxu2 %v829_v7  ;;  %v812_v13 = vld [vmem:[#allocation10 + $0xe0] sm:$0xff]  ;;  %v811_v16 = vld [vmem:[#allocation10 + $0xd8] sm:$0xff]  ;;  %v794_v18 = vld [vmem:[#allocation10 + $0x50] sm:$0xff] }
  0x9d   : > { %838 = vmatpush.msra.mxu0 %v797_v8  ;;  %v810_v19 = vld [vmem:[#allocation10 + $0xd0] sm:$0xff]  ;;  %v825_v20 = vld [vmem:[#allocation10 + $0x148] sm:$0xff]  ;;  %v824_v23 = vld [vmem:[#allocation10 + $0x140] sm:$0xff] }
  0x9e   : > { %858 = vmatpush.msra.mxu1 %v813_v10  ;;  %879 = vmatpush.msra.mxu2 %v828_v11  ;;  %v793_v21 = vld [vmem:[#allocation10 + $0x48] sm:$0xff]  ;;  %v792_v24 = vld [vmem:[#allocation10 + $0x40] sm:$0xff]  ;;  %v823_v26 = vld [vmem:[#allocation10 + $0x138] sm:$0xff] }
  0x9f   : > { %839 = vmatpush.msra.mxu0 %v796_v12  ;;  %v809_v22 = vld [vmem:[#allocation10 + $0xc8] sm:$0xff]  ;;  %v808_v25 = vld [vmem:[#allocation10 + $0xc0] sm:$0xff]  ;;  %v791_v27 = vld [vmem:[#allocation10 + $0x38] sm:$0xff] }
  0xa0   : > { %859 = vmatpush.msra.mxu1 %v812_v13  ;;  %880 = vmatpush.msra.mxu2 %v827_v14  ;;  %v807_v28 = vld [vmem:[#allocation10 + $0xb8] sm:$0xff]  ;;  %v822_v29 = vld [vmem:[#allocation10 + $0x130] sm:$0xff]  ;;  %v821_v34 = vld [vmem:[#allocation10 + $0x128] sm:$0xff]  ;;  %s1560_s7 = scalar_lea.hbm %s3020_s6, %s2544_s19  ;;  %s2344_s18 = scalar_lea.hbm %s3020_s6, 2 }
  0xa1   : > { %840 = vmatpush.msra.mxu0 %v795_v15  ;;  %v790_v30 = vld [vmem:[#allocation10 + $0x30] sm:$0xff]  ;;  %v919_v31 = vld [vmem:[#allocation13 + $0x78] sm:$0xff]  ;;  %v789_v35 = vld [vmem:[#allocation10 + $0x28] sm:$0xff]  ;;  %s1564_s3 = sshll.u32 %s1560_s7, 4  ;;  %s1565_s3 = int_to_ptr.hbm [resolvable:$true] %s1564_s3 }
  0xa2   : > { %860 = vmatpush.msra.mxu1 %v811_v16  ;;  %881 = vmatpush.msra.mxu2 %v826_v17  ;;  %v806_v32 = vld [vmem:[#allocation10 + $0xb0] sm:$0xff]  ;;  %v805_v36 = vld [vmem:[#allocation10 + $0xa8] sm:$0xff]  ;;  %v820_v38 = vld [vmem:[#allocation10 + $0x120] sm:$0xff] }
  0xa3   : > { %841 = vmatpush.msra.mxu0 %v794_v18  ;;  %v918_v33 = vld [vmem:[#allocation13 + $0x70] sm:$0xff]  ;;  %956 = vmatpush.msra.mxu3 %v919_v31  ;;  %v917_v37 = vld [vmem:[#allocation13 + $0x68] sm:$0xff]  ;;  %v788_v39 = vld [vmem:[#allocation10 + $0x20] sm:$0xff] }
  0xa4   : > { %861 = vmatpush.msra.mxu1 %v810_v19  ;;  %882 = vmatpush.msra.mxu2 %v825_v20  ;;  %v804_v40 = vld [vmem:[#allocation10 + $0xa0] sm:$0xff]  ;;  %v819_v42 = vld [vmem:[#allocation10 + $0x118] sm:$0xff]  ;;  %v818_v46 = vld [vmem:[#allocation10 + $0x110] sm:$0xff] }
  0xa5   : > { %842 = vmatpush.msra.mxu0 %v793_v21  ;;  %957 = vmatpush.msra.mxu3 %v918_v33  ;;  %v916_v41 = vld [vmem:[#allocation13 + $0x60] sm:$0xff]  ;;  %v787_v43 = vld [vmem:[#allocation10 + $0x18] sm:$0xff]  ;;  %v786_v47 = vld [vmem:[#allocation10 + $0x10] sm:$0xff] }
  0xa6   : > { %862 = vmatpush.msra.mxu1 %v809_v22  ;;  %883 = vmatpush.msra.mxu2 %v824_v23  ;;  %v803_v44 = vld [vmem:[#allocation10 + $0x98] sm:$0xff]  ;;  %v802_v48 = vld [vmem:[#allocation10 + $0x90] sm:$0xff]  ;;  %v774_v49 = vld [vmem:[%s2736_s4] sm:$0xff]  ;;  %s1562_s4 = sshll.u32 %s773_s15, 4  ;;  %s1563_s4 = int_to_ptr.vmem [resolvable:$true] %s1562_s4 }
  0xa7   : > { %843 = vmatpush.msra.mxu0 %v792_v24  ;;  %958 = vmatpush.msra.mxu3 %v917_v37  ;;  %v915_v45 = vld [vmem:[#allocation13 + $0x58] sm:$0xff]  ;;  %v914_v50 = vld [vmem:[#allocation13 + $0x50] sm:$0xff]  ;;  %v817_v51 = vld [vmem:[#allocation10 + $0x108] sm:$0xff]  ;;  %v780_v56 = vrot.slane %v774_v49, 2  ;;  %v776_v59 = vrot.slane %v774_v49, 1 }
  0xa8   : > { %863 = vmatpush.msra.mxu1 %v808_v25  ;;  %884 = vmatpush.msra.mxu2 %v823_v26  ;;  %v785_v52 = vld [vmem:[#allocation10 + $0x8] sm:$0xff]  ;;  %v816_v55 = vld [vmem:[#allocation10 + $0x100] sm:$0xff]  ;;  %v934_v62 = vld [vmem:[#allocation13 + $0xf0] sm:$0xff] }
  0xa9   : > { %844 = vmatpush.msra.mxu0 %v791_v27  ;;  %959 = vmatpush.msra.mxu3 %v916_v41  ;;  %v801_v53 = vld [vmem:[#allocation10 + $0x88] sm:$0xff]  ;;  %v784_v57 = vld [vmem:[#allocation10] sm:$0xff]  ;;  %v950_v1 = vld [vmem:[#allocation13 + $0x170] sm:$0xff] }
  0xaa   : > { %864 = vmatpush.msra.mxu1 %v807_v28  ;;  %885 = vmatpush.msra.mxu2 %v822_v29  ;;  %v913_v54 = vld [vmem:[#allocation13 + $0x48] sm:$0xff]  ;;  %v800_v58 = vld [vmem:[#allocation10 + $0x80] sm:$0xff]  ;;  %v910_v3 = vld [vmem:[#allocation13 + $0x30] sm:$0xff] }
  0xab   : > { %845 = vmatpush.msra.mxu0 %v790_v30  ;;  %960 = vmatpush.msra.mxu3 %v915_v45  ;;  %v935_v60 = vld [vmem:[#allocation13 + $0xf8] sm:$0xff]  ;;  %v912_v61 = vld [vmem:[#allocation13 + $0x40] sm:$0xff]  ;;  %v933_v0 = vld [vmem:[#allocation13 + $0xe8] sm:$0xff] }
  0xac   : > { %865 = vmatpush.msra.mxu1 %v806_v32  ;;  %886 = vmatpush.msra.mxu2 %v821_v34  ;;  %v951_v63 = vld [vmem:[#allocation13 + $0x178] sm:$0xff]  ;;  %v932_v4 = vld [vmem:[#allocation13 + $0xe0] sm:$0xff]  ;;  %v949_v5 = vld [vmem:[#allocation13 + $0x168] sm:$0xff] }
  0xad   : > { %846 = vmatpush.msra.mxu0 %v789_v35  ;;  %961 = vmatpush.msra.mxu3 %v914_v50  ;;  %v911_v2 = vld [vmem:[#allocation13 + $0x38] sm:$0xff]  ;;  %v909_v6 = vld [vmem:[#allocation13 + $0x28] sm:$0xff]  ;;  %v948_v8 = vld [vmem:[#allocation13 + $0x160] sm:$0xff] }
  0xae   : > { %866 = vmatpush.msra.mxu1 %v805_v36  ;;  %887 = vmatpush.msra.mxu2 %v820_v38  ;;  %v931_v7 = vld [vmem:[#allocation13 + $0xd8] sm:$0xff]  ;;  %v908_v9 = vld [vmem:[#allocation13 + $0x20] sm:$0xff]  ;;  %v930_v10 = vld [vmem:[#allocation13 + $0xd0] sm:$0xff] }
  0xaf   : > { %847 = vmatpush.msra.mxu0 %v788_v39  ;;  %962 = vmatpush.msra.mxu3 %v913_v54  ;;  %v947_v11 = vld [vmem:[#allocation13 + $0x158] sm:$0xff]  ;;  %v929_v13 = vld [vmem:[#allocation13 + $0xc8] sm:$0xff]  ;;  %v946_v14 = vld [vmem:[#allocation13 + $0x150] sm:$0xff] }
  0xb0   : > { %867 = vmatpush.msra.mxu1 %v804_v40  ;;  %888 = vmatpush.msra.mxu2 %v819_v42  ;;  %v907_v12 = vld [vmem:[#allocation13 + $0x18] sm:$0xff]  ;;  %v906_v15 = vld [vmem:[#allocation13 + $0x10] sm:$0xff]  ;;  %v928_v16 = vld [vmem:[#allocation13 + $0xc0] sm:$0xff] }
  0xb1   : > { %848 = vmatpush.msra.mxu0 %v787_v43  ;;  %963 = vmatpush.msra.mxu3 %v912_v61  ;;  %v945_v17 = vld [vmem:[#allocation13 + $0x148] sm:$0xff]  ;;  %v927_v19 = vld [vmem:[#allocation13 + $0xb8] sm:$0xff]  ;;  %v944_v20 = vld [vmem:[#allocation13 + $0x140] sm:$0xff] }
  0xb2   : > { %868 = vmatpush.msra.mxu1 %v803_v44  ;;  %889 = vmatpush.msra.mxu2 %v818_v46  ;;  %v905_v18 = vld [vmem:[#allocation13 + $0x8] sm:$0xff]  ;;  %v904_v21 = vld [vmem:[#allocation13] sm:$0xff]  ;;  %v926_v22 = vld [vmem:[#allocation13 + $0xb0] sm:$0xff] }
  0xb3   : > { %849 = vmatpush.msra.mxu0 %v786_v47  ;;  %964 = vmatpush.msra.mxu3 %v911_v2  ;;  %v943_v23 = vld [vmem:[#allocation13 + $0x138] sm:$0xff]  ;;  %v925_v25 = vld [vmem:[#allocation13 + $0xa8] sm:$0xff]  ;;  %v942_v26 = vld [vmem:[#allocation13 + $0x130] sm:$0xff] }
  0xb4   : > { %869 = vmatpush.msra.mxu1 %v802_v48  ;;  %890 = vmatpush.msra.mxu2 %v817_v51  ;;  %v1117_v24 = vld [vmem:[#allocation18 + $0x78] sm:$0xff]  ;;  %v1116_v27 = vld [vmem:[#allocation18 + $0x70] sm:$0xff]  ;;  %v941_v29 = vld [vmem:[#allocation13 + $0x128] sm:$0xff] }
  0xb5   : > { %850 = vmatpush.msra.mxu0 %v785_v52  ;;  %965 = vmatpush.msra.mxu3 %v910_v3  ;;  %v924_v28 = vld [vmem:[#allocation13 + $0xa0] sm:$0xff]  ;;  %v1115_v30 = vld [vmem:[#allocation18 + $0x68] sm:$0xff]  ;;  %v923_v31 = vld [vmem:[#allocation13 + $0x98] sm:$0xff] }
  0xb6   : > { %870 = vmatpush.msra.mxu1 %v801_v53  ;;  %891 = vmatpush.msra.mxu2 %v816_v55  ;;  %v940_v32 = vld [vmem:[#allocation13 + $0x120] sm:$0xff]  ;;  %v922_v34 = vld [vmem:[#allocation13 + $0x90] sm:$0xff]  ;;  %v939_v35 = vld [vmem:[#allocation13 + $0x118] sm:$0xff] }
  0xb7   : > { %851 = vmatpush.msra.mxu0 %v784_v57  ;;  %1779 = vmatmul.msk.f32.vlgmr.msra.gmra.mxu2 %vm782_vm0, %v780_v56  ;;  %v1114_v33 = vld [vmem:[#allocation18 + $0x60] sm:$0xff]  ;;  %v1113_v36 = vld [vmem:[#allocation18 + $0x58] sm:$0xff]  ;;  %v938_v38 = vld [vmem:[#allocation13 + $0x110] sm:$0xff] }
  0xb8   : > { %852 = vmatmul.f32.vlgmr.msra.gmra.mxu0 %v774_v49  ;;  %871 = vmatpush.msra.mxu1 %v800_v58  ;;  %v921_v37 = vld [vmem:[#allocation13 + $0x88] sm:$0xff]  ;;  %v920_v39 = vld [vmem:[#allocation13 + $0x80] sm:$0xff]  ;;  %v1112_v43 = vld [vmem:[#allocation18 + $0x50] sm:$0xff] }
  0xb9   : > { %976 = vmatpush.msrb.mxu0 %v935_v60  ;;  %1778 = vmatmul.msk.f32.vlgmr.msra.gmra.mxu1 %vm778_vm1, %v776_v59  ;;  %v937_v40 = vld [vmem:[#allocation13 + $0x108] sm:$0xff]  ;;  %v1133_v41 = vld [vmem:[#allocation18 + $0xf8] sm:$0xff]  ;;  %v1132_v44 = vld [vmem:[#allocation18 + $0xf0] sm:$0xff] }
  0xba   : > { %996 = vmatpush.msrb.mxu1 %v951_v63  ;;  %966 = vmatpush.msra.mxu3 %v909_v6  ;;  %v936_v42 = vld [vmem:[#allocation13 + $0x100] sm:$0xff]  ;;  %v1111_v46 = vld [vmem:[#allocation18 + $0x48] sm:$0xff]  ;;  %v1148_v48 = vld [vmem:[#allocation18 + $0x170] sm:$0xff] }
  0xbb   : > { %977 = vmatpush.msrb.mxu0 %v934_v62  ;;  %v1149_v45 = vld [vmem:[#allocation18 + $0x178] sm:$0xff]  ;;  %v1131_v47 = vld [vmem:[#allocation18 + $0xe8] sm:$0xff]  ;;  %v1110_v49 = vld [vmem:[#allocation18 + $0x40] sm:$0xff] }
  0xbc   : > { %997 = vmatpush.msrb.mxu1 %v950_v1  ;;  %967 = vmatpush.msra.mxu3 %v908_v9  ;;  %v1130_v50 = vld [vmem:[#allocation18 + $0xe0] sm:$0xff]  ;;  %v1147_v51 = vld [vmem:[#allocation18 + $0x168] sm:$0xff]  ;;  %v1109_v52 = vld [vmem:[#allocation18 + $0x38] sm:$0xff] }
  0xbd   : > { %978 = vmatpush.msrb.mxu0 %v933_v0  ;;  %v1129_v53 = vld [vmem:[#allocation18 + $0xd8] sm:$0xff]  ;;  %v1146_v54 = vld [vmem:[#allocation18 + $0x160] sm:$0xff]  ;;  %v1108_v55 = vld [vmem:[#allocation18 + $0x30] sm:$0xff] }
  0xbe   : > { %998 = vmatpush.msrb.mxu1 %v949_v5  ;;  %968 = vmatpush.msra.mxu3 %v907_v12  ;;  %v1128_v56 = vld [vmem:[#allocation18 + $0xd0] sm:$0xff]  ;;  %v1145_v57 = vld [vmem:[#allocation18 + $0x158] sm:$0xff]  ;;  %v1107_v58 = vld [vmem:[#allocation18 + $0x28] sm:$0xff] }
  0xbf   : > { %979 = vmatpush.msrb.mxu0 %v932_v4  ;;  %v1127_v59 = vld [vmem:[#allocation18 + $0xc8] sm:$0xff]  ;;  %v1144_v60 = vld [vmem:[#allocation18 + $0x150] sm:$0xff]  ;;  %v1106_v61 = vld [vmem:[#allocation18 + $0x20] sm:$0xff] }
  0xc0   : > { %999 = vmatpush.msrb.mxu1 %v948_v8  ;;  %969 = vmatpush.msra.mxu3 %v906_v15  ;;  %v1126_v62 = vld [vmem:[#allocation18 + $0xc0] sm:$0xff]  ;;  %v1143_v63 = vld [vmem:[#allocation18 + $0x148] sm:$0xff]  ;;  %v1105_v0 = vld [vmem:[#allocation18 + $0x18] sm:$0xff] }
  0xc1   : > { %980 = vmatpush.msrb.mxu0 %v931_v7  ;;  %v1125_v1 = vld [vmem:[#allocation18 + $0xb8] sm:$0xff]  ;;  %v1142_v2 = vld [vmem:[#allocation18 + $0x140] sm:$0xff]  ;;  %v1104_v3 = vld [vmem:[#allocation18 + $0x10] sm:$0xff] }
  0xc2   : > { %1000 = vmatpush.msrb.mxu1 %v947_v11  ;;  %970 = vmatpush.msra.mxu3 %v905_v18  ;;  %v1124_v4 = vld [vmem:[#allocation18 + $0xb0] sm:$0xff]  ;;  %v1141_v5 = vld [vmem:[#allocation18 + $0x138] sm:$0xff]  ;;  %v1103_v6 = vld [vmem:[#allocation18 + $0x8] sm:$0xff] }
  0xc3   : > { %981 = vmatpush.msrb.mxu0 %v930_v10  ;;  %v1123_v7 = vld [vmem:[#allocation18 + $0xa8] sm:$0xff]  ;;  %v1140_v8 = vld [vmem:[#allocation18 + $0x130] sm:$0xff]  ;;  %v1102_v9 = vld [vmem:[#allocation18] sm:$0xff] }
  0xc4   : > { %1001 = vmatpush.msrb.mxu1 %v946_v14  ;;  %971 = vmatpush.msra.mxu3 %v904_v21  ;;  %v1122_v10 = vld [vmem:[#allocation18 + $0xa0] sm:$0xff]  ;;  %v1139_v11 = vld [vmem:[#allocation18 + $0x128] sm:$0xff]  ;;  %v1121_v12 = vld [vmem:[#allocation18 + $0x98] sm:$0xff] }
  0xc5   : > { %982 = vmatpush.msrb.mxu0 %v929_v13  ;;  %v1138_v13 = vld [vmem:[#allocation18 + $0x120] sm:$0xff]  ;;  %v1120_v14 = vld [vmem:[#allocation18 + $0x90] sm:$0xff]  ;;  %v1137_v15 = vld [vmem:[#allocation18 + $0x118] sm:$0xff] }
  0xc6   : > { %1002 = vmatpush.msrb.mxu1 %v945_v17  ;;  %1154 = vmatpush.msrb.mxu3 %v1117_v24  ;;  %v1136_v17 = vld [vmem:[#allocation18 + $0x110] sm:$0xff]  ;;  %v1118_v18 = vld [vmem:[#allocation18 + $0x80] sm:$0xff] }
  0xc7   : > { %983 = vmatpush.msrb.mxu0 %v928_v16  ;;  %v1119_v16 = vld [vmem:[#allocation18 + $0x88] sm:$0xff] }
  0xc8   : > { %1003 = vmatpush.msrb.mxu1 %v944_v20  ;;  %1155 = vmatpush.msrb.mxu3 %v1116_v27  ;;  %v1135_v20 = vld [vmem:[#allocation18 + $0x108] sm:$0xff] }
  0xc9   : > { %984 = vmatpush.msrb.mxu0 %v927_v19  ;;  %v1965_v19 = vld [vmem:[#allocation12] ss:$0 sm:$0xff] }
  0xca   : > { %1004 = vmatpush.msrb.mxu1 %v943_v23  ;;  %1156 = vmatpush.msrb.mxu3 %v1115_v30  ;;  %v1052_v30 = vld [vmem:[#allocation16 + $0x68] sm:$0xff] }
  0xcb   : > { %985 = vmatpush.msrb.mxu0 %v926_v22  ;;  %v1134_v22 = vld [vmem:[#allocation18 + $0x100] sm:$0xff] }
  0xcc   : > { %1005 = vmatpush.msrb.mxu1 %v942_v26  ;;  %1157 = vmatpush.msrb.mxu3 %v1114_v33  ;;  %v1287_v33 = vld [vmem:[#allocation19 + $0xf8] sm:$0xff] }
  0xcd   : > { %986 = vmatpush.msrb.mxu0 %v925_v25 }
  0xce   : > { %1006 = vmatpush.msrb.mxu1 %v941_v29  ;;  %1158 = vmatpush.msrb.mxu3 %v1113_v36  ;;  %v1053_v29 = vld [vmem:[#allocation16 + $0x70] sm:$0xff] }
  0xcf   : > { %987 = vmatpush.msrb.mxu0 %v924_v28  ;;  %v1054_v28 = vld [vmem:[#allocation16 + $0x78] sm:$0xff] }
  0xd0   : > { %1007 = vmatpush.msrb.mxu1 %v940_v32  ;;  %1159 = vmatpush.msrb.mxu3 %v1112_v43  ;;  %v1078_v36 = vld [vmem:[%s2750_s16] sm:$0xff] }
  0xd1   : > { %988 = vmatpush.msrb.mxu0 %v923_v31  ;;  %1056 = vmatpush.msrb.mxu2 %v1054_v28  ;;  %v1051_v31 = vld [vmem:[#allocation16 + $0x60] sm:$0xff]  ;;  %v1094_v43 = vrot.slane %v1078_v36, 2 }
  0xd2   : > { %1008 = vmatpush.msrb.mxu1 %v939_v35  ;;  %1160 = vmatpush.msrb.mxu3 %v1111_v46  ;;  %v1260_v28 = vld [vmem:[#allocation19 + $0x20] sm:$0xff] }
  0xd3   : > { %989 = vmatpush.msrb.mxu0 %v922_v34  ;;  %1057 = vmatpush.msrb.mxu2 %v1053_v29  ;;  %v1275_v29 = vld [vmem:[#allocation19 + $0x98] sm:$0xff] }
  0xd4   : > { %1009 = vmatpush.msrb.mxu1 %v938_v38  ;;  %1161 = vmatpush.msrb.mxu3 %v1110_v49  ;;  %v1077_v38 = vld [vmem:[%s2743_s24] sm:$0xff]  ;;  %s2338_s24 = sshra.s32 %s1565_s3, 4  ;;  %s2339_s24 = int_to_ptr.hbm [resolvable:$true] %s2338_s24 }
  0xd5   : > { %990 = vmatpush.msrb.mxu0 %v921_v37  ;;  %1058 = vmatpush.msrb.mxu2 %v1052_v30  ;;  %v1050_v37 = vld [vmem:[#allocation16 + $0x58] sm:$0xff]  ;;  %v2809_v30 = vld [vmem:[#allocation19 + $0x130] sm:$0xff]  ;;  %s2340_s19 = scalar_lea.hbm %s2339_s24, 1  ;;  %p2345_p13 = scmp.lt.s32.totalorder %s2339_s24, %s3020_s6 }
  0xd6   : > { %1010 = vmatpush.msrb.mxu1 %v937_v40  ;;  %1162 = vmatpush.msrb.mxu3 %v1109_v52  ;;  %v1084_v40 = vrot.slane %v1077_v38, 1  ;;  %v1046_v49 = vld [vmem:[#allocation16 + $0x38] sm:$0xff]  ;;  %p2341_p10 = scmp.ne.s32.totalorder %s2339_s24, %s2340_s19  ;;  %p2346_p3 = scmp.lt.s32.totalorder %s2344_s18, %s2340_s19 }
  0xd7   : > { %991 = vmatpush.msrb.mxu0 %v920_v39  ;;  %1059 = vmatpush.msrb.mxu2 %v1051_v31  ;;  %v1049_v39 = vld [vmem:[#allocation16 + $0x50] sm:$0xff]  ;;  %v1259_v31 = vld [vmem:[#allocation19 + $0x18] sm:$0xff] }
  0xd8   : > { %1011 = vmatpush.msrb.mxu1 %v936_v42  ;;  %1163 = vmatpush.msrb.mxu3 %v1108_v55  ;;  %v1085_v42 = vrot.slane %v1078_v36, 1  ;;  %p2342_p6 = pnand %p2341_p10, %p2617_p4  ;;  %p2347_p7 = por %p2346_p3, %p2345_p13 }
  0xd9   : > { %1180 = vmatpush.msra.mxu0 %v1133_v41  ;;  %v1093_v41 = vrot.slane %v1077_v38, 2  ;;  %1060 = vmatpush.msrb.mxu2 %v1050_v37  ;;  %v1257_v37 = vld [vmem:[#allocation19 + $0x8] sm:$0xff] }
  0xda   : > { %1206 = vmatpush.msra.mxu1 %v1149_v45  ;;  %1164 = vmatpush.msrb.mxu3 %v1107_v58  ;;  %v1047_v45 = vld [vmem:[#allocation16 + $0x40] sm:$0xff]  ;;  %v1086_v46 = vsel %vm778_vm1, %v1084_v40, %v1085_v42  ;;  %v1041_v58 = vld [vmem:[#allocation16 + $0x10] sm:$0xff]  ;;  %p2343_p11 = pneg %p2342_p6 }
  0xdb   : > { %1181 = vmatpush.msra.mxu0 %v1132_v44  ;;  %v1048_v44 = vld [vmem:[#allocation16 + $0x48] sm:$0xff]  ;;  %1061 = vmatpush.msrb.mxu2 %v1049_v39  ;;  %v2818_v39 = vld [vmem:[#allocation19 + $0x118] sm:$0xff]  ;;  %v1256_v40 = vld [vmem:[#allocation19] sm:$0xff] }
  0xdc   : > { %1207 = vmatpush.msra.mxu1 %v1148_v48  ;;  %1165 = vmatpush.msrb.mxu3 %v1106_v61  ;;  %v1782_v48 = vld [vmem:[%s2750_s16 + $0x8] sm:$0xff]  ;;  %p2348_p9 = pnand %p2347_p7, %p2343_p11 }
  0xdd   : > { %1182 = vmatpush.msra.mxu0 %v1131_v47  ;;  %v1095_v47 = vsel %vm782_vm0, %v1093_v41, %v1094_v43  ;;  %1062 = vmatpush.msrb.mxu2 %v1048_v44  ;;  %v1096_v52 = vrot.slane %v1782_v48, 2  ;;  %v1271_v61 = vld [vmem:[#allocation19 + $0x78] sm:$0xff]  ;;  %v2822_v41 = vld [vmem:[#allocation19 + $0x110] sm:$0xff]  ;;  %v2826_v44 = vld [vmem:[#allocation19 + $0x108] sm:$0xff] }
  0xde   : > { %1208 = vmatpush.msra.mxu1 %v1147_v51  ;;  %1166 = vmatpush.msrb.mxu3 %v1105_v0  ;;  %v1087_v51 = vrot.slane %v1782_v48, 1  ;;  %v1285_v0 = vld [vmem:[#allocation19 + $0xe8] sm:$0xff] }
  0xdf   : > { %1183 = vmatpush.msra.mxu0 %v1130_v50  ;;  %1063 = vmatpush.msrb.mxu2 %v1047_v45  ;;  %v1045_v50 = vld [vmem:[#allocation16 + $0x30] sm:$0xff] }
  0xe0   : > { %1209 = vmatpush.msra.mxu1 %v1146_v54  ;;  %1167 = vmatpush.msrb.mxu3 %v1104_v3  ;;  %v1043_v54 = vld [vmem:[#allocation16 + $0x20] sm:$0xff]  ;;  %v1088_v55 = vsel %vm778_vm1, %v1085_v42, %v1087_v51  ;;  %v2782_v3 = vld [vmem:[#allocation19 + $0x178] sm:$0xff] }
  0xe1   : > { %1184 = vmatpush.msra.mxu0 %v1129_v53  ;;  %1064 = vmatpush.msrb.mxu2 %v1046_v49  ;;  %v1044_v53 = vld [vmem:[#allocation16 + $0x28] sm:$0xff] }
  0xe2   : > { %1210 = vmatpush.msra.mxu1 %v1145_v57  ;;  %1168 = vmatpush.msrb.mxu3 %v1103_v6  ;;  %v1042_v57 = vld [vmem:[#allocation16 + $0x18] sm:$0xff]  ;;  %v2785_v6 = vld [vmem:[#allocation19 + $0x170] sm:$0xff] }
  0xe3   : > { %1185 = vmatpush.msra.mxu0 %v1128_v56  ;;  %1065 = vmatpush.msrb.mxu2 %v1045_v50  ;;  %v1097_v56 = vsel %vm782_vm0, %v1094_v43, %v1096_v52  ;;  %v1966_v43 = vld [vmem:[#allocation15] ss:$0 sm:$0xff] }
  0xe4   : > { %1211 = vmatpush.msra.mxu1 %v1144_v60  ;;  %1169 = vmatpush.msrb.mxu3 %v1102_v9  ;;  %v1039_v60 = vld [vmem:[#allocation16] sm:$0xff]  ;;  %v2788_v9 = vld [vmem:[#allocation19 + $0x168] sm:$0xff] }
  0xe5   : > { %1186 = vmatpush.msra.mxu0 %v1127_v59  ;;  %1066 = vmatpush.msrb.mxu2 %v1044_v53  ;;  %v1040_v59 = vld [vmem:[#allocation16 + $0x8] sm:$0xff] }
  0xe6   : > { %1212 = vmatpush.msra.mxu1 %v1143_v63  ;;  %v1270_v63 = vld [vmem:[#allocation19 + $0x70] sm:$0xff] }
  0xe7   : > { %1187 = vmatpush.msra.mxu0 %v1126_v62  ;;  %1067 = vmatpush.msrb.mxu2 %v1043_v54  ;;  %v1286_v62 = vld [vmem:[#allocation19 + $0xf0] sm:$0xff]  ;;  %v1967_v54 = vld [vmem:[%s2943_s10] ss:$0 sm:$0xff] }
  0xe8   : > { %1213 = vmatpush.msra.mxu1 %v1142_v2  ;;  %v1284_v2 = vld [vmem:[#allocation19 + $0xe0] sm:$0xff] }
  0xe9   : > { %1188 = vmatpush.msra.mxu0 %v1125_v1  ;;  %1068 = vmatpush.msrb.mxu2 %v1042_v57  ;;  %v1269_v1 = vld [vmem:[#allocation19 + $0x68] sm:$0xff] }
  0xea   : > { %1214 = vmatpush.msra.mxu1 %v1141_v5  ;;  %v1283_v5 = vld [vmem:[#allocation19 + $0xd8] sm:$0xff] }
  0xeb   : > { %1189 = vmatpush.msra.mxu0 %v1124_v4  ;;  %1069 = vmatpush.msrb.mxu2 %v1041_v58  ;;  %v1268_v4 = vld [vmem:[#allocation19 + $0x60] sm:$0xff] }
  0xec   : > { %1215 = vmatpush.msra.mxu1 %v1140_v8  ;;  %v1282_v8 = vld [vmem:[#allocation19 + $0xd0] sm:$0xff] }
  0xed   : > { %1190 = vmatpush.msra.mxu0 %v1123_v7  ;;  %1070 = vmatpush.msrb.mxu2 %v1040_v59  ;;  %v1267_v7 = vld [vmem:[#allocation19 + $0x58] sm:$0xff] }
  0xee   : > { %1216 = vmatpush.msra.mxu1 %v1139_v11  ;;  %v1281_v11 = vld [vmem:[#allocation19 + $0xc8] sm:$0xff] }
  0xef   : > { %1191 = vmatpush.msra.mxu0 %v1122_v10  ;;  %1071 = vmatpush.msrb.mxu2 %v1039_v60  ;;  %v1266_v10 = vld [vmem:[#allocation19 + $0x50] sm:$0xff] }
  0xf0   : > { %1217 = vmatpush.msra.mxu1 %v1138_v13  ;;  %v1265_v13 = vld [vmem:[#allocation19 + $0x48] sm:$0xff] }
  0xf1   : > { %1192 = vmatpush.msra.mxu0 %v1121_v12  ;;  %1308 = vmatpush.msra.mxu2 %v1271_v61  ;;  %v2791_v12 = vld [vmem:[#allocation19 + $0x160] sm:$0xff] }
  0xf2   : > { %1218 = vmatpush.msra.mxu1 %v1137_v15  ;;  %v2794_v15 = vld [vmem:[#allocation19 + $0x158] sm:$0xff] }
  0xf3   : > { %1193 = vmatpush.msra.mxu0 %v1120_v14  ;;  %1309 = vmatpush.msra.mxu2 %v1270_v63  ;;  %v1280_v14 = vld [vmem:[#allocation19 + $0xc0] sm:$0xff] }
  0xf4   : > { %1219 = vmatpush.msra.mxu1 %v1136_v17  ;;  %v1279_v17 = vld [vmem:[#allocation19 + $0xb8] sm:$0xff] }
  0xf5   : > { %1194 = vmatpush.msra.mxu0 %v1119_v16  ;;  %1310 = vmatpush.msra.mxu2 %v1269_v1  ;;  %v1264_v16 = vld [vmem:[#allocation19 + $0x40] sm:$0xff] }
  0xf6   : > { %1220 = vmatpush.msra.mxu1 %v1135_v20  ;;  %v1278_v20 = vld [vmem:[#allocation19 + $0xb0] sm:$0xff] }
  0xf7   : > { %1195 = vmatpush.msra.mxu0 %v1118_v18  ;;  %1311 = vmatpush.msra.mxu2 %v1268_v4  ;;  %v2797_v18 = vld [vmem:[#allocation19 + $0x150] sm:$0xff] }
  0xf8   : > { %1221 = vmatpush.msra.mxu1 %v1134_v22  ;;  %v1262_v22 = vld [vmem:[#allocation19 + $0x30] sm:$0xff] }
  0xf9   : > { %1312 = vmatpush.msra.mxu2 %v1267_v7 }
  0xfb   : > { %1313 = vmatpush.msra.mxu2 %v1266_v10 }
  0xfd   : > { %1314 = vmatpush.msra.mxu2 %v1265_v13 }
  0xff   : > { %1315 = vmatpush.msra.mxu2 %v1264_v16 }
 0x135   : > { %v853_v21 = vpop.f32.mrf.mxu0 }
 0x136   : > { %v854_v23 = vadd.f32 %v1965_v19, %v853_v21  ;;  %v873_v24 = vpop.f32.mrf.mxu1  ;;  %v1263_v19 = vld [vmem:[#allocation19 + $0x38] sm:$0xff]  ;;  %v2800_v21 = vld [vmem:[#allocation19 + $0x148] sm:$0xff] }
 0x137   : > { %1316 = vmatpush.msra.mxu2 %v1263_v19 }
 0x138   : > { %v874_v25 = vadd.f32 %v873_v24, %v854_v23  ;;  %v1277_v23 = vld [vmem:[#allocation19 + $0xa8] sm:$0xff]  ;;  %v2803_v24 = vld [vmem:[#allocation19 + $0x140] sm:$0xff] }
 0x139   : > { %1317 = vmatpush.msra.mxu2 %v1262_v22 }
 0x13a   : > { %v893_v26 = vpop.f32.mrf.mxu2 }
 0x13b   : > { %v894_v27 = vadd.f32 %v893_v26, %v874_v25  ;;  %v1261_v25 = vld [vmem:[#allocation19 + $0x28] sm:$0xff]  ;;  %v1276_v26 = vld [vmem:[#allocation19 + $0xa0] sm:$0xff] }
 0x13c   : > { %1318 = vmatpush.msra.mxu2 %v1261_v25 }
 0x13d   : > { %1970 = vtanh.f32 %v894_v27  ;;  %v2806_v27 = vld [vmem:[#allocation19 + $0x138] sm:$0xff] }
 0x13e   : > { %1319 = vmatpush.msra.mxu2 %v1260_v28 }
 0x140   : > { %1320 = vmatpush.msra.mxu2 %v1259_v31 }
 0x143   : > { %v1971_v32 = vpop.eup %1970 }
 0x144   : > { %972 = vmatmul.f32.vlgmr.msra.gmra.mxu3 %v1971_v32  ;;  %v898_v34 = vrot.slane %v1971_v32, 1  ;;  %v901_v35 = vrot.slane %v1971_v32, 2  ;;  %v1274_v32 = vld [vmem:[#allocation19 + $0x90] sm:$0xff] }
 0x145   : > { %1334 = vmatpush.msra.mxu3 %v1287_v33  ;;  %v2812_v33 = vld [vmem:[#allocation19 + $0x128] sm:$0xff] }
 0x146   : > { %1780 = vmatmul.msk.f32.vlgmr.msrb.gmra.mxu0 %vm778_vm1, %v898_v34  ;;  %1781 = vmatmul.msk.f32.vlgmr.msrb.gmra.mxu1 %vm782_vm0, %v901_v35  ;;  %v1258_v34 = vld [vmem:[#allocation19 + $0x10] sm:$0xff]  ;;  %v1273_v35 = vld [vmem:[#allocation19 + $0x88] sm:$0xff] }
 0x147   : > { %1335 = vmatpush.msra.mxu3 %v1286_v62  ;;  %1360 = vmatpush.msrb.mxu0 %v2782_v3 }
 0x148   : > { %1321 = vmatpush.msra.mxu2 %v1258_v34 }
 0x149   : > { %1336 = vmatpush.msra.mxu3 %v1285_v0  ;;  %1361 = vmatpush.msrb.mxu0 %v2785_v6 }
 0x14a   : > { %1322 = vmatpush.msra.mxu2 %v1257_v37 }
 0x14b   : > { %1337 = vmatpush.msra.mxu3 %v1284_v2  ;;  %1362 = vmatpush.msrb.mxu0 %v2788_v9 }
 0x14c   : > { %1170 = vmatmul.f32.vlgmr.msrb.gmra.mxu3 %v1077_v38  ;;  %v1272_v38 = vld [vmem:[#allocation19 + $0x80] sm:$0xff]  ;;  %1323 = vmatpush.msra.mxu2 %v1256_v40 }
 0x14d   : > { %1338 = vmatpush.msra.mxu3 %v1283_v5  ;;  %1363 = vmatpush.msrb.mxu0 %v2791_v12 }
 0x14e   : > { %1196 = vmatmul.f32.vlgmr.msra.gmra.mxu0 %v1086_v46  ;;  %1222 = vmatmul.f32.vlgmr.msra.gmra.mxu1 %v1095_v47  ;;  %v1017_v46 = vlaneseq  ;;  %v2830_v47 = vld [vmem:[#allocation19 + $0x100] sm:$0xff] }
 0x14f   : > { %1339 = vmatpush.msra.mxu3 %v1282_v8  ;;  %1364 = vmatpush.msrb.mxu0 %v2794_v15 }
 0x151   : > { %1340 = vmatpush.msra.mxu3 %v1281_v11  ;;  %1365 = vmatpush.msrb.mxu0 %v2797_v18 }
 0x153   : > { %1341 = vmatpush.msra.mxu3 %v1280_v14  ;;  %1366 = vmatpush.msrb.mxu0 %v2800_v21 }
 0x154   : > { %1173 = vmatmul.f32.gmra.mxu3 %v1078_v36  ;;  %v2815_v36 = vld [vmem:[#allocation19 + $0x120] sm:$0xff] }
 0x155   : > { %1342 = vmatpush.msra.mxu3 %v1279_v17  ;;  %1367 = vmatpush.msrb.mxu0 %v2803_v24 }
 0x156   : > { %1199 = vmatmul.f32.gmra.mxu0 %v1088_v55  ;;  %1225 = vmatmul.f32.gmra.mxu1 %v1097_v56 }
 0x157   : > { %1343 = vmatpush.msra.mxu3 %v1278_v20  ;;  %1368 = vmatpush.msrb.mxu0 %v2806_v27 }
 0x159   : > { %1344 = vmatpush.msra.mxu3 %v1277_v23  ;;  %1369 = vmatpush.msrb.mxu0 %v2809_v30 }
 0x15b   : > { %1345 = vmatpush.msra.mxu3 %v1276_v26  ;;  %1370 = vmatpush.msrb.mxu0 %v2812_v33 }
 0x15c   : > { %1176 = vmatmul.f32.gmra.mxu3 %v1782_v48 }
 0x15d   : > { %1346 = vmatpush.msra.mxu3 %v1275_v29  ;;  %1371 = vmatpush.msrb.mxu0 %v2815_v36 }
 0x15e   : > { %1783 = vmatmul.msk.f32.gmra.mxu0 %vm778_vm1, %v1087_v51  ;;  %1784 = vmatmul.msk.f32.gmra.mxu1 %vm782_vm0, %v1096_v52  ;;  %v2835_v51 = vshrl.u32 %v1017_v46, 7 }
 0x15f   : > { %1347 = vmatpush.msra.mxu3 %v1274_v32  ;;  %1372 = vmatpush.msrb.mxu0 %v2818_v39 }
 0x160   : > { %v1023_v56 = vand.u32 7, %v2835_v51 }
 0x161   : > { %1348 = vmatpush.msra.mxu3 %v1273_v35  ;;  %1373 = vmatpush.msrb.mxu0 %v2822_v41 }
 0x162   : > { %vm2845_vm2 = vcmp.lt.s32.totalorder %v1023_v56, 4  ;;  %v1439_v56 = vld [vmem:[#allocation21 + $0x8] sm:$0xff] }
 0x163   : > { %1349 = vmatpush.msra.mxu3 %v1272_v38  ;;  %1374 = vmatpush.msrb.mxu0 %v2826_v44 }
 0x165   : > { %1790 = vmatpush.msrb.mxu3 %v2782_v3  ;;  %1375 = vmatpush.msrb.mxu0 %v2830_v47 }
 0x167   : > { %1792 = vmatpush.msrb.mxu3 %v2785_v6 }
 0x169   : > { %1794 = vmatpush.msrb.mxu3 %v2788_v9 }
 0x16b   : > { %1796 = vmatpush.msrb.mxu3 %v2791_v12 }
 0x16d   : > { %1798 = vmatpush.msrb.mxu3 %v2794_v15 }
 0x16f   : > { %1800 = vmatpush.msrb.mxu3 %v2797_v18 }
 0x171   : > { %1802 = vmatpush.msrb.mxu3 %v2800_v21 }
 0x173   : > { %1804 = vmatpush.msrb.mxu3 %v2803_v24 }
 0x175   : > { %1806 = vmatpush.msrb.mxu3 %v2806_v27 }
 0x177   : > { %1808 = vmatpush.msrb.mxu3 %v2809_v30 }
 0x179   : > { %1810 = vmatpush.msrb.mxu3 %v2812_v33 }
 0x17b   : > { %1812 = vmatpush.msrb.mxu3 %v2815_v36 }
 0x17d   : > { %1814 = vmatpush.msrb.mxu3 %v2818_v39 }
 0x17f   : > { %1816 = vmatpush.msrb.mxu3 %v2822_v41 }
 0x181   : > { %1818 = vmatpush.msrb.mxu3 %v2826_v44 }
 0x183   : > { %1820 = vmatpush.msrb.mxu3 %v2830_v47 }
 0x1c3   : > { %v993_v42 = vpop.f32.mrf.mxu0  ;;  %v1013_v45 = vpop.f32.mrf.mxu1 }
 0x1c7   : > { %v973_v48 = vpop.f32.mrf.mxu3 }
 0x1c8   : > { %v974_v49 = vadd.f32 %v1966_v43, %v973_v48 }
 0x1ca   : > { %v994_v50 = vadd.f32 %v993_v42, %v974_v49  ;;  %v1442_v49 = vld [vmem:[#allocation21 + $0x20] sm:$0xff] }
 0x1cb   : > { %v1197_v52 = vpop.f32.mrf.mxu0  ;;  %v1223_v55 = vpop.f32.mrf.mxu1 }
 0x1cc   : > { %v1014_v53 = vadd.f32 %v1013_v45, %v994_v50  ;;  %v1444_v45 = vld [vmem:[#allocation21 + $0x30] sm:$0xff] }
 0x1ce   : > { %1972 = vtanh.f32 %v1014_v53 }
 0x1cf   : > { %v1171_v57 = vpop.f32.mrf.mxu3 }
 0x1d0   : > { %v1172_v58 = vadd.f32 %v1967_v54, %v1171_v57  ;;  %v1438_v57 = vld [vmem:[#allocation21] sm:$0xff] }
 0x1d2   : > { %v1198_v61 = vadd.f32 %v1197_v52, %v1172_v58 }
 0x1d3   : > { %v1200_v62 = vpop.f32.mrf.mxu0  ;;  %v1226_v2 = vpop.f32.mrf.mxu1 }
 0x1d4   : > { %v1973_v60 = vpop.eup %1972  ;;  %v1224_v4 = vadd.f32 %v1223_v55, %v1198_v61  ;;  %v1440_v55 = vld [vmem:[#allocation21 + $0x10] sm:$0xff] }
 0x1d5   : > { %v1032_v63 = vsel %vm2845_vm2, %v1973_v60, -2.0 }
 0x1d6   : > { %v1033_v0 = vrot.slane %v1032_v63, 4  ;;  %1974 = vtanh.f32 %v1224_v4 }
 0x1d7   : > { %v1174_v1 = vpop.f32.mrf.mxu3 }
 0x1d8   : > { %v1175_v5 = vadd.f32 %v1967_v54, %v1174_v1  ;;  %v1034_v7 = vmax.f32 %v1032_v63, %v1033_v0  ;;  %v1390_v1 = vadd.s32 16, %v2835_v51 }
 0x1da   : > { %v1201_v8 = vadd.f32 %v1200_v62, %v1175_v5  ;;  %v1035_v10 = vrot.slane %v1034_v7, 2 }
 0x1db   : > { %v1203_v17 = vpop.f32.mrf.mxu0  ;;  %v1229_v22 = vpop.f32.mrf.mxu1 }
 0x1dc   : > { %v1227_v11 = vadd.f32 %v1226_v2, %v1201_v8  ;;  %v1036_v13 = vmax.f32 %v1034_v7, %v1035_v10  ;;  %v1975_v23 = vpop.eup %1974  ;;  %v1389_v8 = vadd.s32 8, %v2835_v51 }
 0x1dd   : > { %v1238_v29 = vrot.slane %v1975_v23, 1  ;;  %v1247_v32 = vrot.slane %v1975_v23, 2 }
 0x1de   : > { %1976 = vtanh.f32 %v1227_v11  ;;  %v1037_v14 = vrot.slane %v1036_v13, 1 }
 0x1df   : > { %v1177_v16 = vpop.f32.mrf.mxu3 }
 0x1e0   : > { %v1178_v19 = vadd.f32 %v1967_v54, %v1177_v16  ;;  %v1038_v20 = vmax.f32 %v1036_v13, %v1037_v14  ;;  %v1441_v54 = vld [vmem:[#allocation21 + $0x18] sm:$0xff]  ;;  %v1402_v13 = vand.u32 7, %v1390_v1  ;;  %v1395_v16 = vand.u32 7, %v1389_v8 }
 0x1e2   : > { %v1204_v25 = vadd.f32 %v1203_v17, %v1178_v19  ;;  %1072 = vmatmul.f32.vlgmr.msrb.gmra.mxu2 %v1038_v20  ;;  %vm1416_vm3 = vcmp.lt.s32.totalorder %v1402_v13, 4  ;;  %vm1415_vm4 = vcmp.lt.s32.totalorder %v1395_v16, 4 }
 0x1e3   : > { %1789 = vmatpush.msrb.mxu2 %v2782_v3 }
 0x1e4   : > { %v1977_v26 = vpop.eup %1976  ;;  %v1230_v28 = vadd.f32 %v1229_v22, %v1204_v25 }
 0x1e5   : > { %1791 = vmatpush.msrb.mxu2 %v2785_v6  ;;  %v1239_v31 = vrot.slane %v1977_v26, 1  ;;  %v1248_v34 = vrot.slane %v1977_v26, 2 }
 0x1e6   : > { %1978 = vtanh.f32 %v1230_v28 }
 0x1e7   : > { %1793 = vmatpush.msrb.mxu2 %v2788_v9  ;;  %v1240_v35 = vsel %vm778_vm1, %v1238_v29, %v1239_v31  ;;  %v1249_v37 = vsel %vm782_vm0, %v1247_v32, %v1248_v34 }
 0x1e8   : > { %1350 = vmatmul.f32.vlgmr.msra.gmra.mxu3 %v1240_v35  ;;  %1376 = vmatmul.f32.vlgmr.msrb.gmra.mxu0 %v1249_v37 }
 0x1e9   : > { %1795 = vmatpush.msrb.mxu2 %v2791_v12 }
 0x1ea   : > { %1324 = vmatmul.f32.vlgmr.msra.gmra.mxu2 %v1975_v23 }
 0x1eb   : > { %1797 = vmatpush.msrb.mxu2 %v2794_v15  ;;  %v1453_v15 = vld [vmem:[#allocation21 + $0x78] sm:$0xff] }
 0x1ec   : > { %v1979_v3 = vpop.eup %1978  ;;  %1466 = vmatpush.msrb.mxu1 %v1453_v15 }
 0x1ed   : > { %1799 = vmatpush.msrb.mxu2 %v2797_v18  ;;  %v1241_v6 = vrot.slane %v1979_v3, 1  ;;  %v1250_v9 = vrot.slane %v1979_v3, 2  ;;  %v1452_v18 = vld [vmem:[#allocation21 + $0x70] sm:$0xff] }
 0x1ee   : > { %1467 = vmatpush.msrb.mxu1 %v1452_v18 }
 0x1ef   : > { %1801 = vmatpush.msrb.mxu2 %v2800_v21  ;;  %v1242_v38 = vsel %vm778_vm1, %v1239_v31, %v1241_v6  ;;  %v1251_v12 = vsel %vm782_vm0, %v1248_v34, %v1250_v9  ;;  %v1451_v21 = vld [vmem:[#allocation21 + $0x68] sm:$0xff] }
 0x1f0   : > { %1353 = vmatmul.f32.gmra.mxu3 %v1242_v38  ;;  %1468 = vmatpush.msrb.mxu1 %v1451_v21  ;;  %v2423_v21 = vmov 0  }
 0x1f1   : > { %1803 = vmatpush.msrb.mxu2 %v2803_v24  ;;  %v1450_v24 = vld [vmem:[#allocation21 + $0x60] sm:$0xff]  ;;  %1962 = vset.pattern.permute.xlu1 %v2423_v21 }
 0x1f2   : > { %1327 = vmatmul.f32.gmra.mxu2 %v1977_v26  ;;  %1469 = vmatpush.msrb.mxu1 %v1450_v24  ;;  %v1055_v24 = vld [vmem:[%s2941_s8] sm:$0x1] }
 0x1f3   : > { %1805 = vmatpush.msrb.mxu2 %v2806_v27  ;;  %1963 = vset.pattern.permute.xlu2 %v2423_v21 }
 0x1f4   : > { %1964 = vset.pattern.permute.xlu0 %v2423_v21 }
 0x1f5   : > { %1807 = vmatpush.msrb.mxu2 %v2809_v30  ;;  %v1449_v30 = vld [vmem:[#allocation21 + $0x58] sm:$0xff] }
 0x1f6   : > { %1470 = vmatpush.msrb.mxu1 %v1449_v30  ;;  %v1969_v30 = vld [vmem:[%s3019_s20] ss:$0 sm:$0xff] }
 0x1f7   : > { %1809 = vmatpush.msrb.mxu2 %v2812_v33  ;;  %v1448_v33 = vld [vmem:[#allocation21 + $0x50] sm:$0xff] }
 0x1f8   : > { %1785 = vmatmul.msk.f32.gmra.mxu3 %vm778_vm1, %v1241_v6  ;;  %1471 = vmatpush.msrb.mxu1 %v1448_v33 }
 0x1f9   : > { %1811 = vmatpush.msrb.mxu2 %v2815_v36  ;;  %v1968_v36 = vld [vmem:[%s2945_s12] ss:$0 sm:$0xff] }
 0x1fa   : > { %1330 = vmatmul.f32.gmra.mxu2 %v1979_v3 }
 0x1fb   : > { %1813 = vmatpush.msrb.mxu2 %v2818_v39  ;;  %v1447_v39 = vld [vmem:[#allocation21 + $0x48] sm:$0xff] }
 0x1fc   : > { %1472 = vmatpush.msrb.mxu1 %v1447_v39 }
 0x1fd   : > { %1815 = vmatpush.msrb.mxu2 %v2822_v41  ;;  %v1446_v41 = vld [vmem:[#allocation21 + $0x40] sm:$0xff] }
 0x1fe   : > { %1473 = vmatpush.msrb.mxu1 %v1446_v41  ;;  %v1517_v41 = vld [vmem:[#allocation3] sm:$0x1] }
 0x1ff   : > { %1817 = vmatpush.msrb.mxu2 %v2826_v44  ;;  %v1445_v44 = vld [vmem:[#allocation21 + $0x38] sm:$0xff]  ;;  %1520 = vperm.xlu2 %1963, %v1517_v41  }
 0x200   : > { %1786 = vmatmul.msk.f32.vlgmr.msrb.gmra.mxu3 %vm782_vm0, %v1250_v9  ;;  %1474 = vmatpush.msrb.mxu1 %v1445_v44 }
 0x201   : > { %1819 = vmatpush.msrb.mxu2 %v2830_v47  ;;  %v1443_v47 = vld [vmem:[#allocation21 + $0x28] sm:$0xff] }
 0x202   : > { %1379 = vmatmul.f32.vlgmr.msrb.gmra.mxu2 %v1251_v12  ;;  %1475 = vmatpush.msrb.mxu1 %v1444_v45 }
 0x204   : > { %1476 = vmatpush.msrb.mxu1 %v1443_v47 }
 0x206   : > { %1477 = vmatpush.msrb.mxu1 %v1442_v49 }
 0x208   : > { %1478 = vmatpush.msrb.mxu1 %v1441_v54 }
 0x20a   : > { %1479 = vmatpush.msrb.mxu1 %v1440_v55 }
 0x20c   : > { %1480 = vmatpush.msrb.mxu1 %v1439_v56 }
 0x20e   : > { %1481 = vmatpush.msrb.mxu1 %v1438_v57 }
 0x259   : > { %v1521_v55 = vpop.permute.xlu2 %1520 }
 0x265   : > { %v2880_v27 = vpop.f32.mrf.mxu2  ;;  %v1377_v50 = vpop.f32.mrf.mxu0 }
 0x266   : > { %v1074_v33 = vadd.f32 %v2880_v27, %v1055_v24  ;;  %v1509_v27 = vld [vmem:[#allocation2] sm:$0x1] }
 0x26b   : > { %v1351_v40 = vpop.f32.mrf.mxu3 }
 0x26d   : > { %v1325_v42 = vpop.f32.mrf.mxu2 }
 0x26e   : > { %v1326_v43 = vadd.f32 %v1968_v36, %v1325_v42 }
 0x270   : > { %v1352_v46 = vadd.f32 %v1351_v40, %v1326_v43 }
 0x272   : > { %v1378_v53 = vadd.f32 %v1377_v50, %v1352_v46 }
 0x273   : > { %v1354_v48 = vpop.f32.mrf.mxu3 }
 0x274   : > { %1980 = vtanh.f32 %v1378_v53 }
 0x275   : > { %v1328_v52 = vpop.f32.mrf.mxu2 }
 0x276   : > { %v1329_v63 = vadd.f32 %v1968_v36, %v1328_v52 }
 0x278   : > { %v1355_v7 = vadd.f32 %v1354_v48, %v1329_v63 }
 0x27a   : > { %v1981_v62 = vpop.eup %1980 }
 0x27b   : > { %v1357_v58 = vpop.f32.mrf.mxu3  ;;  %v1417_v2 = vsel %vm2845_vm2, %v1981_v62, -2.0 }
 0x27c   : > { %v1420_v11 = vrot.slane %v1417_v2, 4 }
 0x27d   : > { %v1331_v60 = vpop.f32.mrf.mxu2 }
 0x27e   : > { %v1332_v61 = vadd.f32 %v1968_v36, %v1331_v60  ;;  %v1421_v17 = vmax.f32 %v1417_v2, %v1420_v11  ;;  %v1523_v60 = vperm.slane %v1521_v55, 0 }
 0x280   : > { %v1358_v0 = vadd.f32 %v1357_v58, %v1332_v61  ;;  %v1422_v23 = vrot.slane %v1421_v17, 2 }
 0x282   : > { %v1423_v31 = vmax.f32 %v1421_v17, %v1422_v23 }
 0x283   : > { %v1383_v4 = vpop.f32.mrf.mxu3 }
 0x284   : > { %v1384_v5 = vadd.f32 %v1383_v4, %v1358_v0  ;;  %v1424_v37 = vrot.slane %v1423_v31, 1 }
 0x285   : > { %v1380_v10 = vpop.f32.mrf.mxu2 }
 0x286   : > { %1982 = vtanh.f32 %v1384_v5  ;;  %v1381_v14 = vadd.f32 %v1380_v10, %v1355_v7  ;;  %v1425_v38 = vmax.f32 %v1423_v31, %v1424_v37 }
 0x288   : > { %1984 = vtanh.f32 %v1381_v14 }
 0x289   : > { %1986 = vtanh.f32 %v1074_v33 }
 0x28c   : > { %v1983_v19 = vpop.eup %1982 }
 0x28d   : > { %v1419_v20 = vsel %vm1416_vm3, %v1983_v19, -2.0 }
 0x28e   : > { %v1985_v22 = vpop.eup %1984  ;;  %v1432_v59 = vrot.slane %v1419_v20, 4 }
 0x28f   : > { %v1418_v25 = vsel %vm1415_vm4, %v1985_v22, -2.0  ;;  %v1987_v40 = vpop.eup %1986 }
 0x290   : > { %v1433_v26 = vmax.f32 %v1419_v20, %v1432_v59  ;;  %v1426_v28 = vrot.slane %v1418_v25, 4 }
 0x292   : > { %v1434_v29 = vrot.slane %v1433_v26, 2  ;;  %v1427_v51 = vmax.f32 %v1418_v25, %v1426_v28 }
 0x294   : > { %v1428_v32 = vrot.slane %v1427_v51, 2  ;;  %v1435_v34 = vmax.f32 %v1433_v26, %v1434_v29 }
 0x296   : > { %v1429_v35 = vmax.f32 %v1427_v51, %v1428_v32  ;;  %v1436_v3 = vrot.slane %v1435_v34, 1 }
 0x298   : > { %v1430_v6 = vrot.slane %v1429_v35, 1  ;;  %v1437_v12 = vmax.f32 %v1435_v34, %v1436_v3 }
 0x29a   : > { %v1431_v9 = vmax.f32 %v1429_v35, %v1430_v6 }
 0x29c   : > { %v1462_v15 = vsel %vm1461_vm5, %v1431_v9, %v1425_v38 }
 0x29d   : > { %v1464_v18 = vsel %vm1463_vm6, %v1437_v12, %v1462_v15 }
 0x29e   : > { %1482 = vmatmul.f32.vlgmr.msrb.gmra.mxu1 %v1464_v18 }
 0x31b   : > { %v1483_v36 = vpop.f32.mrf.mxu1 }
 0x31c   : > { %v1484_v39 = vadd.f32 %v1969_v30, %v1483_v36 }
 0x31e   : > { %1988 = vtanh.f32 %v1484_v39 }
 0x324   : > { %v1989_v42 = vpop.eup %1988 }
 0x325   : > { %v1487_v43 = vmul.f32 %v1989_v42, %v1987_v40  ;;  %v1499_v44 = vrot.slane %v1989_v42, 2  ;;  %v1493_v47 = vrot.slane %v1989_v42, 1 }
 0x327   : > { %v1489_v45 = vsel %vm1488_vm7, %v1487_v43, 0.0  ;;  %v1501_v46 = vmul.f32 %v1987_v40, %v1499_v44  ;;  %v1495_v49 = vmul.f32 %v1987_v40, %v1493_v47 }
 0x328   : > { %1490 = vadd.xlane.f32.xlu0 %v1489_v45 }
 0x329   : > { %v1502_v48 = vsel %vm1488_vm7, %v1501_v46, 0.0  ;;  %v1496_v50 = vsel %vm1488_vm7, %v1495_v49, 0.0 }
 0x32a   : > { %1503 = vadd.xlane.f32.xlu1 %v1502_v48 }
 0x330   : > { %1497 = vadd.xlane.f32.xlu0 %v1496_v50 }
 0x343   : > { %1512 = vperm.xlu1 %1962, %v1509_v27  }
 0x39b   : > { %v1491_v52 = vpop.xlane.xlu0 %1490 }
 0x39d   : > { %v1504_v53 = vpop.xlane.xlu1 %1503 }
 0x3a3   : > { %v1498_v54 = vpop.xlane.xlu0 %1497 }
 0x3a4   : > { %v1506_v56 = vsel %vm1505_vm8, %v1491_v52, %v1498_v54 }
 0x3a5   : > { %v1508_v61 = vsel %vm1507_vm9, %v1506_v56, %v1504_v53 }
 0x3b5   : > { %v1513_v57 = vpop.permute.xlu1 %1512 }
 0x3b6   : > { %v1515_v58 = vperm.slane %v1513_v57, 0 }
 0x3b8   : > { %v1516_v62 = vmul.f32 %v1515_v58, %v1508_v61 }
 0x3ba   : > { %v1524_v63 = vadd.f32 %v1523_v60, %v1516_v62 }
 0x3bc   : > { %v1526_v0 = vsel %vm1525_vm10, %v1524_v63, -inf }
 0x3bd   : > { %1527 = vmax.xlane.f32.xlu2 %v1526_v0 }
 0x430   : > { %v1528_v1 = vpop.xlane.xlu2 %1527 }
 0x431   : > { %v1529_v2 = vsub.f32 %v1524_v63, %v1528_v1 }
 0x433   : > { %v1530_v4 = vmul.f32 1.442695, %v1529_v2 }
 0x435   : > { %1990 = vpow2.f32 %v1530_v4 }
 0x43b   : > { %v1991_v5 = vpop.eup %1990 }
 0x43c   : > { %v1532_v7 = vsel %vm1525_vm10, %v1991_v5, 0.0 }
 0x43d   : > { %1533 = vadd.xlane.f32.xlu0 %v1532_v7 }
 0x4b0   : > { %v1534_v8 = vpop.xlane.xlu0 %1533 }
 0x4b1   : > { %1992 = vrcp.f32 %v1534_v8  ;;  %v1546_v14 = vand.u32 2147483648, %v1534_v8  ;;  %v1544_v17 = vand.u32 2147483647, %v1534_v8  ;;  %vm1540_vm12 = vweird.f32 %v1534_v8 }
 0x4b3   : > { %v1547_v20 = vor.u32 1.1754944e-38, %v1546_v14  ;;  %vm1545_vm14 = vcmp.eq.f32.partialorder %v1544_v17, 8.507059e+37 }
 0x4b7   : > { %v1993_v10 = vpop.eup %1992 }
 0x4b8   : > { %v1536_v11 = vmul.f32 %v1993_v10, %v1534_v8  ;;  %vm1541_vm11 = vweird.f32 %v1993_v10 }
 0x4b9   : > { %vm1542_vm13 = vmor %vm1540_vm12, %vm1541_vm11 }
 0x4ba   : > { %v1537_v13 = vsub.f32 1.0, %v1536_v11 }
 0x4bc   : > { %v1538_v16 = vmul.f32 %v1993_v10, %v1537_v13 }
 0x4be   : > { %v1539_v19 = vadd.f32 %v1993_v10, %v1538_v16 }
 0x4c0   : > { %v1543_v22 = vsel %vm1542_vm13, %v1993_v10, %v1539_v19 }
 0x4c1   : > { %v1548_v59 = vsel %vm1545_vm14, %v1547_v20, %v1543_v22 }
 0x4c2   : > { %v1549_v23 = vmul.f32 %v1991_v5, %v1548_v59 }
 0x4c4   : > { %1550 = vst.msk [vmem:[%s773_s15] sm:$0x1] %vm1525_vm10, %v1549_v23 }
 0x4c5   : > { %2351 = shalt.err (!%p2348_p9)
}
 0x4c6   : > { %1859 = dma.vmem_to_hbm [thread:$0]  (%p2617_p4), %s1563_s4, 16, %s1565_s3, %s1552_s1  }
 0x4c7 PF: > { %s3022_s5 = sld [smem:[#allocation30_spill]] }
 0x4c8   : > { %s3024_s17 = sld [smem:[#allocation32_spill]] }
 0x4cd   : > { %s1576_s11 = sand.u32 1, %s3022_s5  }
 0x4ce   : > { %p3025_p0 = scmp.ge.s32.totalorder %s3024_s17, 2  ;;  %s1577_s23 = scalar_lea.sflag [#allocation6], %s1576_s11 }
 0x4d0   : > { %p1897_p2 = pnand %p3025_p0, %p2621_p5 }
 0x4d2   : > { %p1898_p12 = pneg %p1897_p2 }
 0x4d4   : > { %2393 = dma.done.wait (%p1898_p12), %s1577_s23, 16  }
 0x4d5   : > { %2395 = vsyncadd (%p1898_p12), %s1577_s23, 4294967280  ;;  %s3026_s0 = sld [smem:[#allocation33_spill]]  ;;  %s3029_s28 = smov %s2402_s29 }
 0x4d6   : > { %s3027_s14 = sld [smem:[#allocation31_spill]] }
 0x4d7   : > { %s3028_s15 = sld [smem:[#allocation34_spill]] }
 0x4db   : > { %p41_p1 = scmp.ge.s32.totalorder %s3026_s0, 4  }
 0x4dc   : > { %s3030_s29 = smov %s3027_s14 }
 0x4dd   :  { %43 = sbr.rel (!%p41_p1) target bundleno = 22 (0x16), region = 190 }
 0x4e2   :  { %1582 = vsyncpa [#allocation5], 1 }
 0x4e3   :  { %1584 = vsyncpa [#allocation5 + $0x1], 1 }
 0x4e4   :  { %1585 = vsyncpa [#allocation8], 1 }
 0x4e5   :  { %1587 = vsyncpa [#allocation8 + $0x1], 1 }
 0x4e6   :  { %1588 = vsyncpa [#allocation11], 1 }
 0x4e7   :  { %1589 = vsyncpa [#allocation14], 1 }
 0x4e8   :  { %1590 = vsyncpa [#allocation17], 1 }
 0x4e9   :  { %1591 = vsyncpa [#allocation20], 1 }
 0x4ea   :  { %1592 = vsyncpa [#allocation6], 1 }
 0x4eb   :  { %1594 = vsyncpa [#allocation6 + $0x1], 1 }

</bundles_post_ra>
